<compile_context>
chip_gen: v6e
topology: v6e:2x2x1
jax: 0.10.0
libtpu: 0.0.40
codegen_flags: <defaults>
</compile_context>

<pallas_src>
import jax
import jax.numpy as jnp
from jax.experimental import pallas as pl
from jax.experimental.pallas import tpu as pltpu

D_IN, D_H, D_Z = 784, 400, 20          # logical dims (PyTorch module)
D_H_P, D_Z_P = 512, 128                # lane-aligned padded dims
D_OUT_P = 896                          # padded recon width (7*128) -> lane-dense stores
D_STATS = 2 * D_Z_P                    # packed (mu|logvar) || z output width (256)
TILE_B_MAX = 512


def _round_up(n, m):
    return ((n + m - 1) // m) * m


def _vae_kernel(x_ref, eps_ref,
                w1_ref, b1_ref, w2122_ref, b2122_ref,
                w3_ref, b3_ref, w4_ref, b4_ref,
                recon_ref, stats_ref):
    # encode: h1 = relu(x @ W1 + b1)   (x already bf16, K = 784 unpadded, f32 acc)
    h1 = jnp.dot(x_ref[...], w1_ref[...],
                 preferred_element_type=jnp.float32) + b1_ref[...]
    h1 = jnp.maximum(h1, 0.0)                                         # (TB, 512) f32

    # fused fc21||fc22 packed into one 128-lane matmul:
    #   lanes [0,20) = mu, lanes [20,40) = logvar, lanes [40,128) = 0
    mulv = jnp.dot(h1.astype(jnp.bfloat16), w2122_ref[...],
                   preferred_element_type=jnp.float32) + b2122_ref[...]  # (TB, 128)

    # XLU lane rotation: bring logvar into lanes [0,20) (aligned with mu/eps)
    lv = pltpu.roll(mulv, shift=D_Z_P - D_Z, axis=1)

    # reparameterize: z = eps * exp(0.5*logvar) + mu
    #   eps is zero outside lanes [0,20), so eps*std vanishes there; adding mulv
    #   gives z in lanes [0,20).  Logvar leaks into lanes [20,40) of z, which is
    #   harmless: W3 rows >= 20 are zero and the wrapper only reads lanes [0,20).
    z = eps_ref[...] * jnp.exp(0.5 * lv) + mulv                       # (TB, 128) f32

    # decode: recon = sigmoid(relu(z @ W3 + b3) @ W4 + b4)
    h3 = jnp.dot(z.astype(jnp.bfloat16), w3_ref[...],
                 preferred_element_type=jnp.float32) + b3_ref[...]
    h3 = jnp.maximum(h3, 0.0)                                         # (TB, 512) f32
    logits = jnp.dot(h3.astype(jnp.bfloat16), w4_ref[...],
                     preferred_element_type=jnp.float32) + b4_ref[...]  # (TB, 896)

    recon_ref[...] = jax.nn.sigmoid(logits).astype(recon_ref.dtype)   # bf16 store
    # packed, 128-aligned stats output -> unmasked full-lane stores
    stats_ref[:, 0:D_Z_P] = mulv
    stats_ref[:, D_Z_P:D_STATS] = z


def _pad2(a, rows, cols):
    return jnp.pad(a, ((0, rows - a.shape[0]), (0, cols - a.shape[1])))


def pack_params(params):
    """Pad to lane-aligned shapes, pack fc21/fc22 into 128 lanes, cast weights to bf16."""
    (w1, b1, w21, b21, w22, b22, w3, b3, w4, b4) = params
    w1p = _pad2(w1, D_IN, D_H_P).astype(jnp.bfloat16)        # (784, 512): K unpadded
    b1p = _pad2(b1, 1, D_H_P)
    w2122 = jnp.zeros((D_H_P, D_Z_P), jnp.float32)           # (512, 128)
    w2122 = w2122.at[:D_H, :D_Z].set(w21)                    # mu lanes [0,20)
    w2122 = w2122.at[:D_H, D_Z:2 * D_Z].set(w22)             # logvar lanes [20,40)
    w2122 = w2122.astype(jnp.bfloat16)
    b2122 = jnp.zeros((1, D_Z_P), jnp.float32)
    b2122 = b2122.at[:, :D_Z].set(b21)
    b2122 = b2122.at[:, D_Z:2 * D_Z].set(b22)
    w3p = _pad2(w3, D_Z_P, D_H_P).astype(jnp.bfloat16)       # (128, 512), rows>=20 zero
    b3p = _pad2(b3, 1, D_H_P)
    w4p = _pad2(w4, D_H_P, D_OUT_P).astype(jnp.bfloat16)     # (512, 896)
    b4p = _pad2(b4, 1, D_OUT_P)
    return (w1p, b1p, w2122, b2122, w3p, b3p, w4p, b4p)


def vae_forward(x_nchw, eps, params):
    """x_nchw: (B, 1, 28, 28) f32.  eps: (B, 20) f32 (the randn_like draw).
    Returns (recon (B,784), mu (B,20), logvar (B,20), z (B,20))."""
    B = x_nchw.shape[0]
    x = x_nchw.reshape(B, D_IN)

    # >= 2 grid steps so both v7x TensorCores get work; tile size derived from
    # the tile count (bounds padding waste) and rounded to 16 for bf16 tiling.
    num_tiles = max(2, pl.cdiv(B, TILE_B_MAX))
    tile_b = _round_up(pl.cdiv(B, num_tiles), 16)
    b_pad = num_tiles * tile_b

    x_p = jnp.pad(x.astype(jnp.bfloat16), ((0, b_pad - B), (0, 0)))      # (b_pad, 784)
    eps_p = jnp.pad(eps.astype(jnp.float32),
                    ((0, b_pad - B), (0, D_Z_P - D_Z)))                  # (b_pad, 128)
    packed = pack_params(params)

    def act_spec(d):   # batch-tiled activation / output blocks
        return pl.BlockSpec((tile_b, d), lambda i: (i, 0))

    def w_spec(shape):  # weights/biases resident across all grid steps
        return pl.BlockSpec(shape, lambda i: (0, 0))

    in_specs = [
        act_spec(D_IN),                   # x (bf16, full 784-wide last dim)
        act_spec(D_Z_P),                  # eps
        w_spec((D_IN, D_H_P)), w_spec((1, D_H_P)),        # fc1
        w_spec((D_H_P, D_Z_P)), w_spec((1, D_Z_P)),       # packed fc21||fc22
        w_spec((D_Z_P, D_H_P)), w_spec((1, D_H_P)),       # fc3
        w_spec((D_H_P, D_OUT_P)), w_spec((1, D_OUT_P)),   # fc4
    ]
    out_specs = (act_spec(D_OUT_P), act_spec(D_STATS))
    out_shapes = (
        jax.ShapeDtypeStruct((b_pad, D_OUT_P), jnp.bfloat16),   # recon (padded, bf16)
        jax.ShapeDtypeStruct((b_pad, D_STATS), jnp.float32),    # (mu|logvar) || z
    )

    recon_p, stats_p = pl.pallas_call(
        _vae_kernel,
        grid=(num_tiles,),
        out_shape=out_shapes,
        in_specs=in_specs,
        out_specs=out_specs,
        compiler_params=pltpu.CompilerParams(
            dimension_semantics=("parallel",),
            vmem_limit_bytes=48 << 20,
        ),
    )(x_p, eps_p, *packed)

    recon = recon_p[:B, :D_IN].astype(jnp.float32)
    mu = stats_p[:B, 0:D_Z]
    logvar = stats_p[:B, D_Z:2 * D_Z]
    z = stats_p[:B, D_Z_P:D_Z_P + D_Z]
    return recon, mu, logvar, z


def init_params(key):
    """nn.Linear-style init: U(-1/sqrt(fan_in), +1/sqrt(fan_in)).
    Weights stored transposed relative to PyTorch, i.e. shape (in, out)."""
    def linear(k, d_in, d_out):
        kw, kb = jax.random.split(k)
        bound = 1.0 / jnp.sqrt(d_in)
        w = jax.random.uniform(kw, (d_in, d_out), jnp.float32, -bound, bound)
        b = jax.random.uniform(kb, (1, d_out), jnp.float32, -bound, bound)
        return w, b

    k1, k21, k22, k3, k4 = jax.random.split(key, 5)
    w1, b1 = linear(k1, D_IN, D_H)      # fc1:  784 -> 400
    w21, b21 = linear(k21, D_H, D_Z)    # fc21: 400 -> 20
    w22, b22 = linear(k22, D_H, D_Z)    # fc22: 400 -> 20
    w3, b3 = linear(k3, D_Z, D_H)       # fc3:  20  -> 400
    w4, b4 = linear(k4, D_H, D_IN)      # fc4:  400 -> 784
    return (w1, b1, w21, b21, w22, b22, w3, b3, w4, b4)


if __name__ == "__main__":
    key = jax.random.PRNGKey(0)
    k_x, k_eps, k_params = jax.random.split(key, 3)

    B = 2
    x = jax.random.normal(k_x, (B, 1, 28, 28), dtype=jnp.float32)   # NCHW, 28*28 = 784
    eps = jax.random.normal(k_eps, (B, D_Z), dtype=jnp.float32)     # torch.randn_like(std)
    params = init_params(k_params)

    recon, mu, logvar, z = vae_forward(x, eps, params)
    jax.block_until_ready((recon, mu, logvar, z))

    # ----- reference 1: same bf16-matmul math as the kernel (tight tolerance)
    (w1, b1, w21, b21, w22, b22, w3, b3, w4, b4) = params
    xf = x.reshape(B, D_IN)
    bf = lambda a: a.astype(jnp.bfloat16)
    dot = lambda a, b: jnp.dot(bf(a), bf(b), preferred_element_type=jnp.float32)
    h1 = jnp.maximum(dot(xf, w1) + b1, 0.0)
    mu_r = dot(h1, w21) + b21
    lv_r = dot(h1, w22) + b22
    z_r = eps * jnp.exp(0.5 * lv_r) + mu_r
    h3 = jnp.maximum(dot(z_r, w3) + b3, 0.0)
    recon_r = jax.nn.sigmoid(dot(h3, w4) + b4)
    assert jnp.allclose(recon, recon_r, atol=5e-3)   # recon is bf16-quantized in-kernel
    assert jnp.allclose(mu, mu_r, atol=1e-3)
    assert jnp.allclose(logvar, lv_r, atol=1e-3)
    assert jnp.allclose(z, z_r, atol=1e-3)

    # ----- reference 2: full-f32 PyTorch-equivalent math (loose tolerance, bf16 MXU)
    h1f = jnp.maximum(xf @ w1 + b1, 0.0)
    mu_f = h1f @ w21 + b21
    lv_f = h1f @ w22 + b22
    z_f = eps * jnp.exp(0.5 * lv_f) + mu_f
    h3f = jnp.maximum(z_f @ w3 + b3, 0.0)
    recon_f = jax.nn.sigmoid(h3f @ w4 + b4)
    assert jnp.allclose(recon, recon_f, atol=2e-2)
    assert jnp.allclose(mu, mu_f, atol=2e-2)
    assert jnp.allclose(logvar, lv_f, atol=2e-2)
    assert jnp.allclose(z, z_f, atol=2e-2)

    print("KERNEL_OK")
</pallas_src>

<mosaic_0001>
module attributes {stable_mosaic.version = 11 : i64} {
  func.func @_vae_kernel(%arg0: i32, %arg1: memref<16x784xbf16, #tpu.memory_space<vmem>>, %arg2: memref<16x128xf32, #tpu.memory_space<vmem>>, %arg3: memref<784x512xbf16, #tpu.memory_space<vmem>>, %arg4: memref<1x512xf32, #tpu.memory_space<vmem>>, %arg5: memref<512x128xbf16, #tpu.memory_space<vmem>>, %arg6: memref<1x128xf32, #tpu.memory_space<vmem>>, %arg7: memref<128x512xbf16, #tpu.memory_space<vmem>>, %arg8: memref<1x512xf32, #tpu.memory_space<vmem>>, %arg9: memref<512x896xbf16, #tpu.memory_space<vmem>>, %arg10: memref<1x896xf32, #tpu.memory_space<vmem>>, %arg11: memref<16x896xbf16, #tpu.memory_space<vmem>>, %arg12: memref<16x256xf32, #tpu.memory_space<vmem>>) attributes {dimension_semantics = [#tpu.dimension_semantics<parallel>], iteration_bounds = array<i64: 2>, scalar_prefetch = 0 : i64, scratch_operands = 0 : i64, tpu.core_type = #tpu.core_type<tc>, window_params = [{transform_indices = @transform_0, window_bounds = array<i64: 16, 784>}, {transform_indices = @transform_1, window_bounds = array<i64: 16, 128>}, {pipeline_mode = #tpu.pipeline_mode<synchronous>, transform_indices = @transform_2, window_bounds = array<i64: 784, 512>}, {pipeline_mode = #tpu.pipeline_mode<synchronous>, transform_indices = @transform_3, window_bounds = array<i64: 1, 512>}, {pipeline_mode = #tpu.pipeline_mode<synchronous>, transform_indices = @transform_4, window_bounds = array<i64: 512, 128>}, {pipeline_mode = #tpu.pipeline_mode<synchronous>, transform_indices = @transform_5, window_bounds = array<i64: 1, 128>}, {pipeline_mode = #tpu.pipeline_mode<synchronous>, transform_indices = @transform_6, window_bounds = array<i64: 128, 512>}, {pipeline_mode = #tpu.pipeline_mode<synchronous>, transform_indices = @transform_7, window_bounds = array<i64: 1, 512>}, {pipeline_mode = #tpu.pipeline_mode<synchronous>, transform_indices = @transform_8, window_bounds = array<i64: 512, 896>}, {pipeline_mode = #tpu.pipeline_mode<synchronous>, transform_indices = @transform_9, window_bounds = array<i64: 1, 896>}, {transform_indices = @transform_10, window_bounds = array<i64: 16, 896>}, {transform_indices = @transform_11, window_bounds = array<i64: 16, 256>}]} {
    %c0 = arith.constant 0 : index
    %c0_0 = arith.constant 0 : index
    %0 = vector.load %arg1[%c0, %c0_0] : memref<16x784xbf16, #tpu.memory_space<vmem>>, vector<16x784xbf16>
    %c0_1 = arith.constant 0 : index
    %c0_2 = arith.constant 0 : index
    %1 = vector.load %arg3[%c0_1, %c0_2] : memref<784x512xbf16, #tpu.memory_space<vmem>>, vector<784x512xbf16>
    %cst = arith.constant dense<0.000000e+00> : vector<16x512xf32>
    %2 = tpu.matmul %0, %1, %cst {dimension_numbers = #tpu.dot_dimension_numbers<[1], [0], [0], [1], [0, 0, 1, 1], [], []>} : vector<16x784xbf16>, vector<784x512xbf16>, vector<16x512xf32> -> vector<16x512xf32>
    %c0_3 = arith.constant 0 : index
    %c0_4 = arith.constant 0 : index
    %3 = vector.load %arg4[%c0_3, %c0_4] : memref<1x512xf32, #tpu.memory_space<vmem>>, vector<1x512xf32>
    %4 = vector.broadcast %3 : vector<1x512xf32> to vector<16x512xf32>
    %5 = arith.addf %2, %4 : vector<16x512xf32>
    %cst_5 = arith.constant 0.000000e+00 : f32
    %6 = vector.broadcast %cst_5 : f32 to vector<16x512xf32>
    %7 = arith.maximumf %5, %6 : vector<16x512xf32>
    %8 = arith.truncf %7 : vector<16x512xf32> to vector<16x512xbf16>
    %c0_6 = arith.constant 0 : index
    %c0_7 = arith.constant 0 : index
    %9 = vector.load %arg5[%c0_6, %c0_7] : memref<512x128xbf16, #tpu.memory_space<vmem>>, vector<512x128xbf16>
    %cst_8 = arith.constant dense<0.000000e+00> : vector<16x128xf32>
    %10 = tpu.matmul %8, %9, %cst_8 {dimension_numbers = #tpu.dot_dimension_numbers<[1], [0], [0], [1], [0, 0, 1, 1], [], []>} : vector<16x512xbf16>, vector<512x128xbf16>, vector<16x128xf32> -> vector<16x128xf32>
    %c0_9 = arith.constant 0 : index
    %c0_10 = arith.constant 0 : index
    %11 = vector.load %arg6[%c0_9, %c0_10] : memref<1x128xf32, #tpu.memory_space<vmem>>, vector<1x128xf32>
    %12 = vector.broadcast %11 : vector<1x128xf32> to vector<16x128xf32>
    %13 = arith.addf %10, %12 : vector<16x128xf32>
    %c108_i32 = arith.constant 108 : i32
    %14 = tpu.dynamic_rotate %13 by %c108_i32 dim 1 : vector<16x128xf32>, i32 -> vector<16x128xf32>
    %c0_11 = arith.constant 0 : index
    %c0_12 = arith.constant 0 : index
    %15 = vector.load %arg2[%c0_11, %c0_12] : memref<16x128xf32, #tpu.memory_space<vmem>>, vector<16x128xf32>
    %cst_13 = arith.constant 5.000000e-01 : f32
    %16 = vector.broadcast %cst_13 : f32 to vector<16x128xf32>
    %17 = arith.mulf %16, %14 : vector<16x128xf32>
    %18 = math.exp %17 : vector<16x128xf32>
    %19 = arith.mulf %15, %18 : vector<16x128xf32>
    %20 = arith.addf %19, %13 : vector<16x128xf32>
    %21 = arith.truncf %20 : vector<16x128xf32> to vector<16x128xbf16>
    %c0_14 = arith.constant 0 : index
    %c0_15 = arith.constant 0 : index
    %22 = vector.load %arg7[%c0_14, %c0_15] : memref<128x512xbf16, #tpu.memory_space<vmem>>, vector<128x512xbf16>
    %cst_16 = arith.constant dense<0.000000e+00> : vector<16x512xf32>
    %23 = tpu.matmul %21, %22, %cst_16 {dimension_numbers = #tpu.dot_dimension_numbers<[1], [0], [0], [1], [0, 0, 1, 1], [], []>} : vector<16x128xbf16>, vector<128x512xbf16>, vector<16x512xf32> -> vector<16x512xf32>
    %c0_17 = arith.constant 0 : index
    %c0_18 = arith.constant 0 : index
    %24 = vector.load %arg8[%c0_17, %c0_18] : memref<1x512xf32, #tpu.memory_space<vmem>>, vector<1x512xf32>
    %25 = vector.broadcast %24 : vector<1x512xf32> to vector<16x512xf32>
    %26 = arith.addf %23, %25 : vector<16x512xf32>
    %cst_19 = arith.constant 0.000000e+00 : f32
    %27 = vector.broadcast %cst_19 : f32 to vector<16x512xf32>
    %28 = arith.maximumf %26, %27 : vector<16x512xf32>
    %29 = arith.truncf %28 : vector<16x512xf32> to vector<16x512xbf16>
    %c0_20 = arith.constant 0 : index
    %c0_21 = arith.constant 0 : index
    %30 = vector.load %arg9[%c0_20, %c0_21] : memref<512x896xbf16, #tpu.memory_space<vmem>>, vector<512x896xbf16>
    %cst_22 = arith.constant dense<0.000000e+00> : vector<16x896xf32>
    %31 = tpu.matmul %29, %30, %cst_22 {dimension_numbers = #tpu.dot_dimension_numbers<[1], [0], [0], [1], [0, 0, 1, 1], [], []>} : vector<16x512xbf16>, vector<512x896xbf16>, vector<16x896xf32> -> vector<16x896xf32>
    %c0_23 = arith.constant 0 : index
    %c0_24 = arith.constant 0 : index
    %32 = vector.load %arg10[%c0_23, %c0_24] : memref<1x896xf32, #tpu.memory_space<vmem>>, vector<1x896xf32>
    %33 = vector.broadcast %32 : vector<1x896xf32> to vector<16x896xf32>
    %34 = arith.addf %31, %33 : vector<16x896xf32>
    %35 = arith.negf %34 : vector<16x896xf32>
    %36 = math.exp %35 : vector<16x896xf32>
    %cst_25 = arith.constant 1.000000e+00 : f32
    %37 = vector.broadcast %cst_25 : f32 to vector<16x896xf32>
    %38 = arith.addf %37, %36 : vector<16x896xf32>
    %39 = arith.divf %37, %38 : vector<16x896xf32>
    %40 = arith.truncf %39 : vector<16x896xf32> to vector<16x896xbf16>
    %c0_26 = arith.constant 0 : index
    %c0_27 = arith.constant 0 : index
    %41 = vector.load %arg11[%c0_26, %c0_27] : memref<16x896xbf16, #tpu.memory_space<vmem>>, vector<16x896xbf16>
    tpu.vector_store %arg11[%c0_26, %c0_27], %40 {strides = array<i32>} : memref<16x896xbf16, #tpu.memory_space<vmem>>, vector<16x896xbf16>,
    %c0_28 = arith.constant 0 : index
    %c0_29 = arith.constant 0 : index
    %42 = vector.load %arg12[%c0_28, %c0_29] : memref<16x256xf32, #tpu.memory_space<vmem>>, vector<16x128xf32>
    tpu.vector_store %arg12[%c0_28, %c0_29], %13 {strides = array<i32>} : memref<16x256xf32, #tpu.memory_space<vmem>>, vector<16x128xf32>,
    %c0_30 = arith.constant 0 : index
    %c128 = arith.constant 128 : index
    %43 = vector.load %arg12[%c0_30, %c128] : memref<16x256xf32, #tpu.memory_space<vmem>>, vector<16x128xf32>
    tpu.vector_store %arg12[%c0_30, %c128], %20 {strides = array<i32>} : memref<16x256xf32, #tpu.memory_space<vmem>>, vector<16x128xf32>,
    return
  }
  func.func @transform_0(%arg0: i32) -> (i32, i32) {
    %c0_i32 = arith.constant 0 : i32
    %c0_i32_0 = arith.constant 0 : i32
    return %arg0, %c0_i32 : i32, i32
  }
  func.func @transform_1(%arg0: i32) -> (i32, i32) {
    %c0_i32 = arith.constant 0 : i32
    %c0_i32_0 = arith.constant 0 : i32
    return %arg0, %c0_i32 : i32, i32
  }
  func.func @transform_2(%arg0: i32) -> (i32, i32) {
    %c0_i32 = arith.constant 0 : i32
    %c0_i32_0 = arith.constant 0 : i32
    %c0_i32_1 = arith.constant 0 : i32
    return %c0_i32, %c0_i32_0 : i32, i32
  }
  func.func @transform_3(%arg0: i32) -> (i32, i32) {
    %c0_i32 = arith.constant 0 : i32
    %c0_i32_0 = arith.constant 0 : i32
    %c0_i32_1 = arith.constant 0 : i32
    return %c0_i32, %c0_i32_0 : i32, i32
  }
  func.func @transform_4(%arg0: i32) -> (i32, i32) {
    %c0_i32 = arith.constant 0 : i32
    %c0_i32_0 = arith.constant 0 : i32
    %c0_i32_1 = arith.constant 0 : i32
    return %c0_i32, %c0_i32_0 : i32, i32
  }
  func.func @transform_5(%arg0: i32) -> (i32, i32) {
    %c0_i32 = arith.constant 0 : i32
    %c0_i32_0 = arith.constant 0 : i32
    %c0_i32_1 = arith.constant 0 : i32
    return %c0_i32, %c0_i32_0 : i32, i32
  }
  func.func @transform_6(%arg0: i32) -> (i32, i32) {
    %c0_i32 = arith.constant 0 : i32
    %c0_i32_0 = arith.constant 0 : i32
    %c0_i32_1 = arith.constant 0 : i32
    return %c0_i32, %c0_i32_0 : i32, i32
  }
  func.func @transform_7(%arg0: i32) -> (i32, i32) {
    %c0_i32 = arith.constant 0 : i32
    %c0_i32_0 = arith.constant 0 : i32
    %c0_i32_1 = arith.constant 0 : i32
    return %c0_i32, %c0_i32_0 : i32, i32
  }
  func.func @transform_8(%arg0: i32) -> (i32, i32) {
    %c0_i32 = arith.constant 0 : i32
    %c0_i32_0 = arith.constant 0 : i32
    %c0_i32_1 = arith.constant 0 : i32
    return %c0_i32, %c0_i32_0 : i32, i32
  }
  func.func @transform_9(%arg0: i32) -> (i32, i32) {
    %c0_i32 = arith.constant 0 : i32
    %c0_i32_0 = arith.constant 0 : i32
    %c0_i32_1 = arith.constant 0 : i32
    return %c0_i32, %c0_i32_0 : i32, i32
  }
  func.func @transform_10(%arg0: i32) -> (i32, i32) {
    %c0_i32 = arith.constant 0 : i32
    %c0_i32_0 = arith.constant 0 : i32
    return %arg0, %c0_i32 : i32, i32
  }
  func.func @transform_11(%arg0: i32) -> (i32, i32) {
    %c0_i32 = arith.constant 0 : i32
    %c0_i32_0 = arith.constant 0 : i32
    return %arg0, %c0_i32 : i32, i32
  }
}

</mosaic_0001>

<bundles_post_ra>
// kernel: tpu_custom_call.1
= control target key start
LH: loop header
LB: loop body
LE: loop exit
PB: predicated region body
PF: predicated region fallthrough
CT: control target
= control target key end

     0   :  { %s7319_s0 = inlined_call_operand.hbm [shape: bf16[32,784], index: 0, kind: input, shape index: {}]   ;;  %s7320_s1 = inlined_call_operand.hbm [shape: f32[32,128], index: 1, kind: input, shape index: {}]   ;;  %s7321_s2 = inlined_call_operand.hbm [shape: bf16[784,512], index: 2, kind: input, shape index: {}]   ;;  %s7322_s3 = inlined_call_operand.vmem [shape: f32[1,512], index: 3, kind: input, shape index: {}]   ;;  %s7323_s4 = inlined_call_operand.hbm [shape: bf16[512,128], index: 4, kind: input, shape index: {}]   ;;  %s7324_s5 = inlined_call_operand.vmem [shape: f32[1,128], index: 5, kind: input, shape index: {}]   ;;  %s7325_s6 = inlined_call_operand.hbm [shape: bf16[128,512], index: 6, kind: input, shape index: {}]   ;;  %s7326_s7 = inlined_call_operand.hbm [shape: f32[1,512], index: 7, kind: input, shape index: {}]   ;;  %s7327_s8 = inlined_call_operand.hbm [shape: bf16[512,896], index: 8, kind: input, shape index: {}]   ;;  %s7328_s9 = inlined_call_operand.vmem [shape: f32[1,896], index: 9, kind: input, shape index: {}]   ;;  %s7329_s10 = inlined_call_operand.hbm [shape: bf16[32,896], index: 10, kind: output, shape index: {0}]   ;;  %s7330_s11 = inlined_call_operand.hbm [shape: f32[32,256], index: 11, kind: output, shape index: {1}]  }
   0x1   :  { %7339 = sst [smem:[#allocation27_spill]] %s7319_s0 }
   0x2   :  { %7340 = sst [smem:[#allocation28_spill]] %s7321_s2 }
   0x3   :  { %7341 = sst [smem:[#allocation29_spill]] %s7323_s4 }
   0x4   :  { %7342 = sst [smem:[#allocation30_spill]] %s7325_s6 }
   0x5   :  { %7343 = sst [smem:[#allocation31_spill]] %s7326_s7 }
   0x6   :  { %7344 = sst [smem:[#allocation32_spill]] %s7327_s8 }
   0x7   :  { %17 = vsyncpa [#allocation3], 0 }
   0x8   :  { %19 = vsyncpa [#allocation3 + $0x1], 0 }
   0x9   :  { %20 = vsyncpa [#allocation6], 0 }
   0xa   :  { %22 = vsyncpa [#allocation6 + $0x1], 0 }
   0xb   :  { %23 = vsyncpa [#allocation9], 0 }
   0xc   :  { %24 = vsyncpa [#allocation12], 0 }
   0xd   :  { %25 = vsyncpa [#allocation4], 0 }
   0xe   :  { %27 = vsyncpa [#allocation4 + $0x1], 0 }
   0xf   :  { %28 = vsyncpa [#allocation16], 0 }
  0x10   :  { %30 = vsyncpa [#allocation16 + $0x1], 0  ;;  %s6862_s17 = smov 0   ;;  %s6864_s18 = smov 0  }
  0x11   :  { %s6866_s19 = smov 0   ;;  %s6868_s20 = smov 0  }
  0x12 LB: > { %7345 = sst [smem:[#allocation24_spill]] %s6773_s19  ;;  %s6779_s21 = smov [#allocation7]   ;;  %s6777_s20 = sphi %s6868_s20, %s7374_s20   ;;  %s6773_s19 = sphi %s6866_s19, %s7376_s19   ;;  %s6769_s18 = sphi %s6864_s18, %s7378_s18   ;;  %s6765_s17 = sphi %s6862_s17, %s7377_s17  }
  0x13   : > { %s325_s22 = sshll.u32 %s6779_s21, 4  ;;  %s6883_s23 = sadd.s32 4294967295, %s6777_s20   ;;  %s326_s22 = int_to_ptr.vmem [resolvable:$true] %s325_s22 }
  0x14   : > { %p4945_p0 = scmp.ge.s32.totalorder %s6777_s20, 1  ;;  %p7333_p1 = scmp.eq.s32.totalorder %s6883_s23, 0 }
  0x15   : > { %p313_p2 = scmp.lt.s32.totalorder %s6777_s20, 3  ;;  %s6780_s25 = smov [#allocation8]  }
  0x16   : > { %s341_s26 = sshll.u32 %s6780_s25, 4  ;;  %s6781_s28 = smov [#allocation11]   ;;  %s6901_s26 = int_to_ptr.vmem [resolvable:$true] %s341_s26 }
  0x17   : > { %p6888_p3 = pnand %p4945_p0, %p313_p2  ;;  %s6903_s29 = sshll.u32 %s6781_s28, 4  ;;  %s372_s29 = int_to_ptr.vmem [resolvable:$true] %s6903_s29 }
  0x18   : > { %s6492_s12 = scalar_lea.vmem %s326_s22, 25088  ;;  %p6500_p11 = scmp.lt.s32.totalorder %s326_s22, %s326_s22 }
  0x19   : > { %p5622_p5 = pneg %p6888_p3  ;;  %p6493_p8 = scmp.ne.s32.totalorder %s326_s22, %s6492_s12 }
  0x1a   : > { %p6501_p12 = scmp.lt.s32.totalorder %s6492_s12, %s6492_s12 }
  0x1b   : > { %p6897_p6 = pnand %p5622_p5, %p7333_p1 }
  0x1c   : > { %p6502_p13 = por %p6501_p12, %p6500_p11 }
  0x1d   : > { %p6907_p7 = pneg %p6897_p6 }
  0x1f   : > { %p6495_p9 = pnand %p6493_p8, %p6907_p7 }
  0x21   : > { %p6496_p10 = pneg %p6495_p9 }
  0x23   : > { %p6503_p0 = pnand %p6502_p13, %p6496_p10 }
  0x25   : > { %6506 = shalt.err (!%p6503_p0)
}
  0x26   : > { %s6782_s13 = smov 256   ;;  %s6783_s14 = smov 16  }
  0x27   : > { %s7349_s2 = sld [smem:[#allocation28_spill]]  ;;  %s6518_s21 = scalar_lea.vmem %s6901_s26, 4096 }
  0x28   : > { %p6519_p2 = scmp.ne.s32.totalorder %s6901_s26, %s6518_s21  ;;  %p6526_p9 = scmp.lt.s32.totalorder %s6901_s26, %s6901_s26 }
  0x29   : > { %p6527_p10 = scmp.lt.s32.totalorder %s6518_s21, %s6518_s21 }
  0x2a   : > { %p6521_p5 = pnand %p6519_p2, %p6907_p7 }
  0x2b   : > { %p6528_p11 = por %p6527_p10, %p6526_p9 }
  0x2c   : > { %p6522_p8 = pneg %p6521_p5 }
  0x2d   : > { %5625 = dma.hbm_to_vmem [thread:$0]  (!%p6897_p6), %s7349_s2, 25088, %s326_s22, [#allocation6], %s6782_s13, %s6782_s13, %s6783_s14  }
  0x2e   : > { %p6529_p12 = pnand %p6528_p11, %p6522_p8 }
  0x30   : > { %6532 = shalt.err (!%p6529_p12)
}
  0x31   : > { %s6784_s25 = smov 64   ;;  %s6785_s28 = smov 4  }
  0x32   : > { %s7350_s4 = sld [smem:[#allocation29_spill]]  ;;  %s6544_s15 = scalar_lea.vmem %s372_s29, 64 }
  0x33   : > { %p6545_p13 = scmp.ne.s32.totalorder %s372_s29, %s6544_s15  ;;  %p6552_p5 = scmp.lt.s32.totalorder %s372_s29, %s372_s29 }
  0x34   : > { %p6553_p8 = scmp.lt.s32.totalorder %s6544_s15, %s6544_s15 }
  0x35   : > { %p6547_p0 = pnand %p6545_p13, %p6907_p7 }
  0x36   : > { %p6554_p9 = por %p6553_p8, %p6552_p5 }
  0x37   : > { %p6548_p2 = pneg %p6547_p0 }
  0x38   : > { %5628 = dma.hbm_to_vmem [thread:$0]  (!%p6897_p6), %s7350_s4, 4096, %s6901_s26, [#allocation9], %s6784_s25, %s6784_s25, %s6785_s28  }
  0x39   : > { %p6555_p10 = pnand %p6554_p9, %p6548_p2 }
  0x3b   : > { %6558 = shalt.err (!%p6555_p10)
}
  0x3c   : > { %s7351_s7 = sld [smem:[#allocation31_spill]]  ;;  %s6786_s12 = smov [#allocation10]  }
  0x3d   : > { %s357_s26 = sshll.u32 %s6786_s12, 4  ;;  %s6787_s25 = smov [#allocation13]   ;;  %s358_s26 = int_to_ptr.vmem [resolvable:$true] %s357_s26 }
  0x3e   : > { %s381_s28 = sshll.u32 %s6787_s25, 4  ;;  %s6570_s22 = scalar_lea.vmem %s358_s26, 4096  ;;  %s382_s28 = int_to_ptr.vmem [resolvable:$true] %s381_s28 }
  0x3f   : > { %p6571_p11 = scmp.ne.s32.totalorder %s358_s26, %s6570_s22  ;;  %p6578_p0 = scmp.lt.s32.totalorder %s358_s26, %s358_s26 }
  0x40   : > { %p6579_p2 = scmp.lt.s32.totalorder %s6570_s22, %s6570_s22 }
  0x41   : > { %p6573_p12 = pnand %p6571_p11, %p6907_p7 }
  0x42   : > { %5634 = dma.hbm_to_vmem [thread:$0]  (!%p6897_p6), %s7351_s7, 64, %s372_s29, [#allocation12]  }
  0x43   : > { %p6574_p13 = pneg %p6573_p12  ;;  %p6580_p5 = por %p6579_p2, %p6578_p0 }
  0x45   : > { %p6581_p8 = pnand %p6580_p5, %p6574_p13 }
  0x47   : > { %6584 = shalt.err (!%p6581_p8)
}
  0x48   : > { %s7352_s6 = sld [smem:[#allocation30_spill]]  ;;  %s6596_s16 = scalar_lea.vmem %s382_s28, 28672 }
  0x49   : > { %p6597_p9 = scmp.ne.s32.totalorder %s382_s28, %s6596_s16  ;;  %p6604_p12 = scmp.lt.s32.totalorder %s382_s28, %s382_s28 }
  0x4a   : > { %p6605_p0 = scmp.lt.s32.totalorder %s6596_s16, %s6596_s16 }
  0x4b   : > { %p6599_p10 = pnand %p6597_p9, %p6907_p7 }
  0x4c   : > { %p6606_p13 = por %p6605_p0, %p6604_p12 }
  0x4d   : > { %p6600_p11 = pneg %p6599_p10 }
  0x4e   : > { %5631 = dma.hbm_to_vmem [thread:$0]  (!%p6897_p6), %s7352_s6, 4096, %s358_s26, [#allocation9], %s6782_s13, %s6782_s13, %s6783_s14  }
  0x4f   : > { %p6607_p2 = pnand %p6606_p13, %p6600_p11 }
  0x51   : > { %6610 = shalt.err (!%p6607_p2)
}
  0x52   : > { %s7331_s21 = smov 448   ;;  %s7332_s30 = smov 28  }
  0x53   : > { %s7353_s8 = sld [smem:[#allocation32_spill]]  ;;  %s4944_s12 = sadd.s32 4294967294, %s6777_s20  }
  0x54   : > { %s6963_s26 = sadd.s32 1, %s6777_s20   ;;  %s43_s25 = sadd.s32 1, %s6773_s19 }
  0x55   : > { %7354 = sst [smem:[#allocation25_spill]] %s6963_s26  ;;  %s40_s22 = ssub.s32 %s6777_s20, %s6963_s26 }
  0x56   : > { %p50_p7 = scmp.ne.s32.totalorder %s6773_s19, %s6769_s18  ;;  %p41_p5 = scmp.eq.s32.totalorder %s40_s22, 0 }
  0x57   : > { %p51_p8 = scmp.eq.s32.totalorder %s6777_s20, 0  ;;  %p56_p9 = scmp.ne.s32.totalorder %s6769_s18, %s6765_s17 }
  0x58   : > { %p274_p10 = scmp.eq.s32.totalorder %s6883_s23, 1  ;;  %p280_p0 = scmp.eq.s32.totalorder %s4944_s12, 1 }
  0x59   : > { %5637 = dma.hbm_to_vmem [thread:$0]  (!%p6897_p6), %s7353_s8, 28672, %s382_s28, [#allocation12], %s7331_s21, %s7331_s21, %s7332_s30  }
  0x5a   : > { %s6975_s27 = scalar_select %p41_p5, %s6773_s19, %s43_s25  }
  0x5b   : > { %p52_p11 = por %p51_p8, %p50_p7  ;;  %p6979_p12 = por %p7333_p1, %p56_p9 }
  0x5c   : > { %7355 = sst [smem:[#allocation26_spill]] %s6975_s27  ;;  %p6983_p6 = por %p274_p10, %p50_p7 }
  0x5d   : > { %s7356_s28 = scalar_select %p6979_p12, 1, 0 }
  0x5e   : > { %s7357_s29 = scalar_select %p6983_p6, 1, 0 }
  0x5f   : > { %p5657_p13 = scmp.lt.s32.totalorder %s6777_s20, 2  ;;  %s6989_s15 = sand.u32 1, %s6773_s19  }
  0x60   : > { %p6991_p2 = por %p280_p0, %p56_p9  ;;  %s5590_s13 = smul.u32 56, %s6989_s15 }
  0x61   : > { %p6996_p5 = pnand %p5657_p13, %p52_p11  ;;  %s5591_s25 = smul.u32 896, %s6777_s20 }
  0x62   : > { %s7358_s16 = scalar_select %p6991_p2, 1, 0 }
  0x63   : > { %s7360_s0 = sld [smem:[#allocation27_spill]]  ;;  %s402_s2 = scalar_lea.vmem [#allocation2], %s5590_s13 }
  0x64   : > { %s410_s4 = sshll.u32 %s402_s2, 4  ;;  %s399_s6 = scalar_lea.sflag [#allocation3], %s6989_s15  ;;  %s7007_s4 = int_to_ptr.vmem [resolvable:$true] %s410_s4 }
  0x65   : > { %p6613_p8 = pneg %p6996_p5 }
  0x69   : > { %s7005_s30 = scalar_lea.hbm %s7360_s0, %s5591_s25  ;;  %s6616_s25 = scalar_lea.hbm %s7360_s0, 1792 }
  0x6a   : > { %s6611_s7 = scalar_lea.hbm %s7005_s30, 896  ;;  %p6617_p11 = scmp.lt.s32.totalorder %s7005_s30, %s7360_s0 }
  0x6b   : > { %p6612_p7 = scmp.ne.s32.totalorder %s7005_s30, %s6611_s7  ;;  %p6618_p0 = scmp.lt.s32.totalorder %s6616_s25, %s6611_s7 }
  0x6d   : > { %p6614_p9 = pnand %p6613_p8, %p6612_p7  ;;  %p6619_p13 = por %p6618_p0, %p6617_p11 }
  0x6f   : > { %p6615_p10 = pneg %p6614_p9 }
  0x71   : > { %p6620_p4 = pnand %p6619_p13, %p6615_p10 }
  0x73   : > { %6623 = shalt.err (!%p6620_p4)
}
  0x74   : > { %s6624_s2 = scalar_lea.vmem %s7007_s4, 896  ;;  %s6790_s13 = smov [#allocation2]  }
  0x75   : > { %p6625_p1 = scmp.ne.s32.totalorder %s7007_s4, %s6624_s2  ;;  %s6629_s22 = sshll.u32 %s6790_s13, 4  ;;  %s6630_s22 = int_to_ptr.vmem [resolvable:$false] %s6629_s22 }
  0x76   : > { %s6631_s21 = scalar_lea.vmem %s6630_s22, 1792  ;;  %p6632_p2 = scmp.lt.s32.totalorder %s7007_s4, %s6630_s22 }
  0x77   : > { %p6627_p7 = pnand %p6625_p1, %p6613_p8  ;;  %p6633_p6 = scmp.lt.s32.totalorder %s6631_s21, %s6624_s2 }
  0x79   : > { %p6628_p9 = pneg %p6627_p7  ;;  %p6634_p12 = por %p6633_p6, %p6632_p2 }
  0x7b   : > { %p6635_p11 = pnand %p6634_p12, %p6628_p9 }
  0x7d   : > { %6638 = shalt.err (!%p6635_p11)
}
  0x7e   : > { %s7361_s7 = smov 28   ;;  %s7362_s8 = smov 448  }
  0x7f   : > { %5641 = dma.hbm_to_vmem [thread:$0]  (!%p6996_p5), %s7005_s30, 896, %s7007_s4, %s399_s6, %s7362_s8, %s7362_s8, %s7361_s7  }
  0x80   : > { %s4955_s25 = sshll.u32 %s6989_s15, 4  ;;  %s5491_s12 = sshll.u32 %s6777_s20, 8 }
  0x81   : > { %s7044_s22 = scalar_lea.hbm %s7320_s1, %s5491_s12  ;;  %s424_s21 = scalar_lea.vmem [#allocation5], %s4955_s25 }
  0x82   : > { %s431_s0 = sshll.u32 %s424_s21, 4  ;;  %s7363_s27 = sand.u32 1, %s6777_s20   ;;  %s7046_s0 = int_to_ptr.vmem [resolvable:$true] %s431_s0 }
  0x83   : > { %s7050_s19 = scalar_lea.sflag [#allocation6], %s7363_s27  ;;  %s6639_s26 = scalar_lea.hbm %s7044_s22, 256 }
  0x84   : > { %p6640_p1 = scmp.ne.s32.totalorder %s7044_s22, %s6639_s26  ;;  %s6644_s30 = scalar_lea.hbm %s7320_s1, 512 }
  0x85   : > { %p6645_p6 = scmp.lt.s32.totalorder %s7044_s22, %s7320_s1  ;;  %p6646_p2 = scmp.lt.s32.totalorder %s6644_s30, %s6639_s26 }
  0x86   : > { %p6642_p4 = pnand %p6640_p1, %p6613_p8 }
  0x87   : > { %p6647_p10 = por %p6646_p2, %p6645_p6 }
  0x88   : > { %p6643_p12 = pneg %p6642_p4 }
  0x8a   : > { %p6648_p0 = pnand %p6647_p10, %p6643_p12 }
  0x8c   : > { %6651 = shalt.err (!%p6648_p0)
}
  0x8d   : > { %s6652_s27 = scalar_lea.vmem %s7046_s0, 256  ;;  %s6791_s8 = smov [#allocation5]  }
  0x8e   : > { %p6653_p13 = scmp.ne.s32.totalorder %s7046_s0, %s6652_s27  ;;  %s6657_s25 = sshll.u32 %s6791_s8, 4  ;;  %s6658_s25 = int_to_ptr.vmem [resolvable:$false] %s6657_s25 }
  0x8f   : > { %s6659_s12 = scalar_lea.vmem %s6658_s25, 512  ;;  %p6660_p11 = scmp.lt.s32.totalorder %s7046_s0, %s6658_s25 }
  0x90   : > { %p6655_p7 = pnand %p6653_p13, %p6613_p8  ;;  %p6661_p1 = scmp.lt.s32.totalorder %s6659_s12, %s6652_s27 }
  0x92   : > { %p6656_p9 = pneg %p6655_p7  ;;  %p6662_p4 = por %p6661_p1, %p6660_p11 }
  0x94   : > { %p6663_p6 = pnand %p6662_p4, %p6656_p9 }
  0x96   : > { %6666 = shalt.err (!%p6663_p6)
}
  0x97   : > { %s6792_s26 = smov 128   ;;  %s6793_s2 = smov 8  }
  0x98   : > { %5644 = dma.hbm_to_vmem [thread:$0]  (!%p6996_p5), %s7044_s22, 256, %s7046_s0, %s7050_s19, %s6792_s26, %s6792_s26, %s6793_s2  }
  0x99   : > { %443 = sbr.rel (%p6888_p3) target bundleno = 1543 (0x607), region = 60  ;;  %s7078_s13 = sand.u32 (!%p6888_p3), 1, %s6769_s18  }
  0x9a   : > { %s5592_s21 = smul.u32 (!%p6888_p3), 56, %s7078_s13  ;;  %s446_s4 = scalar_lea.sflag (!%p6888_p3), [#allocation3], %s7078_s13 }
  0x9b   : > { %p7364_p8 = scmp.ne.s32.totalorder (!%p6888_p3), %s7356_s28, 0 }
  0x9c   : > { %s7084_s6 = scalar_lea.vmem (!%p6888_p3), [#allocation2], %s5592_s21 }
  0x9e   : > { %6736 = dma.done.wait (%p7364_p8), %s446_s4, 896  }
  0x9f   : > { %6738 = vsyncadd (%p7364_p8), %s446_s4, 4294966400  ;;  %s454_s0 = sand.u32 1, %s6883_s23   ;;  %s4959_s19 = sshll.u32 %s7078_s13, 4 }
  0xa0   : > { %s455_s24 = scalar_lea.sflag [#allocation6], %s454_s0  ;;  %s7092_s14 = scalar_lea.vmem [#allocation5], %s4959_s19 }
  0xa1   : > { %6740 = dma.done.wait (%p7364_p8), %s455_s24, 256  }
  0xa2   : > { %6742 = vsyncadd (%p7364_p8), %s455_s24, 4294967040  ;;  %p7365_p3 = scmp.eq.s32.totalorder %s6883_s23, 0 }
  0xa4   : > { %6744 = dma.done.wait (%p7365_p3), [#allocation6], 25088   ;;  %p7366_p5 = pmov %p7365_p3 }
  0xa5   : > { %p7367_p12 = pmov %p7365_p3 }
  0xa6   : > { %6746 = vsyncadd (%p7366_p5), [#allocation6], 4294942208 }
  0xa7   : > { %6748 = dma.done.wait (%p7367_p12), [#allocation9], 8192   ;;  %p7368_p2 = pmov %p7365_p3 }
  0xa9   : > { %6750 = vsyncadd (%p7368_p2), [#allocation9], 4294959104  ;;  %p7369_p10 = pmov %p7368_p2 }
  0xaa   : > { %p7370_p0 = pmov %p7368_p2 }
  0xab   : > { %6752 = dma.done.wait (%p7369_p10), [#allocation12], 28736  }
  0xac   : > { %6754 = vsyncadd (%p7370_p0), [#allocation12], 4294938560  ;;  %v5715_v0 = vld [vmem:[#allocation7 + $0xe4] ss:$16 sps:$4 sm:$0xff]   ;;  %v5719_v2 = vld [vmem:[#allocation7 + $0xe0] ss:$16 sps:$4 sm:$0xff]  }
  0xad   : > { %v5717_v1 = vld [vmem:[#allocation7 + $0x2e4] ss:$16 sps:$4 sm:$0xff]   ;;  %1777 = vmatprep.subr.bf16.mxu0 %v5715_v0  ;;  %v5720_v3 = vld [vmem:[#allocation7 + $0x2e0] ss:$16 sps:$4 sm:$0xff]   ;;  %vm1773_vm0 = vcmask 130048   ;;  %s4965_s7 = sshll.u32 %s7078_s13, 5 }
  0xae   : > { %1820 = vmatprep.subr.bf16.mxu1 %v5717_v1  ;;  %v5721_v4 = vld [vmem:[#allocation7 + $0xc4] ss:$16 sps:$4 sm:$0xff]   ;;  %1778 = vmatpush1.bf16.msra.mxu0 %v5719_v2  ;;  %v5725_v6 = vld [vmem:[#allocation7 + $0xc0] ss:$16 sps:$4 sm:$0xff]   ;;  %s7170_s27 = scalar_lea.vmem [#allocation15], %s4965_s7  ;;  %s6795_s8 = smov 108  }
  0xaf   : > { %1821 = vmatpush1.bf16.msra.mxu1 %v5720_v3  ;;  %v5723_v5 = vld [vmem:[#allocation7 + $0x2c4] ss:$16 sps:$4 sm:$0xff]   ;;  %1779 = vmatprep.subr.bf16.mxu0 %v5721_v4  ;;  %v5726_v7 = vld [vmem:[#allocation7 + $0x2c0] ss:$16 sps:$4 sm:$0xff]   ;;  %s7217_s26 = scalar_lea.vmem [#allocation14], %s5592_s21  ;;  %s4769_s2 = sshll.u32 %s7170_s27, 4  ;;  %s7226_s2 = int_to_ptr.vmem [resolvable:$true] %s4769_s2 }
  0xb0   : > { %1822 = vmatprep.subr.bf16.mxu1 %v5723_v5  ;;  %v5727_v8 = vld [vmem:[#allocation7 + $0xa4] ss:$16 sps:$4 sm:$0xff]   ;;  %v5731_v10 = vld [vmem:[#allocation7 + $0xa0] ss:$16 sps:$4 sm:$0xff]   ;;  %s5501_s21 = sshll.u32 %s6883_s23, 9  ;;  %s4738_s19 = scalar_lea.sflag [#allocation16], %s7078_s13 }
  0xb1   : > { %v5729_v9 = vld [vmem:[#allocation7 + $0x2a4] ss:$16 sps:$4 sm:$0xff]   ;;  %v5732_v11 = vld [vmem:[#allocation7 + $0x2a0] ss:$16 sps:$4 sm:$0xff]   ;;  %s7232_s0 = scalar_lea.hbm %s7330_s11, %s5501_s21  ;;  %s6667_s24 = scalar_lea.vmem %s7226_s2, 512 }
  0xb2   : > { %1780 = vmatpush1.bf16.msra.mxu0 %v5725_v6  ;;  %v5733_v12 = vld [vmem:[#allocation7 + $0x84] ss:$16 sps:$4 sm:$0xff]   ;;  %v5737_v14 = vld [vmem:[#allocation7 + $0x80] ss:$16 sps:$4 sm:$0xff]   ;;  %p6668_p13 = scmp.ne.s32.totalorder %s7226_s2, %s6667_s24  ;;  %p7371_p7 = scmp.ne.s32.totalorder %s7357_s29, 0 }
  0xb3   : > { %1823 = vmatpush1.bf16.msra.mxu1 %v5726_v7  ;;  %1781 = vmatprep.subr.bf16.mxu0 %v5727_v8  ;;  %v5735_v13 = vld [vmem:[#allocation7 + $0x284] ss:$16 sps:$4 sm:$0xff]   ;;  %v5738_v15 = vld [vmem:[#allocation7 + $0x280] ss:$16 sps:$4 sm:$0xff]  }
  0xb4   : > { %1824 = vmatprep.subr.bf16.mxu1 %v5729_v9  ;;  %v5739_v16 = vld [vmem:[#allocation7 + $0x64] ss:$16 sps:$4 sm:$0xff]   ;;  %v5743_v18 = vld [vmem:[#allocation7 + $0x60] ss:$16 sps:$4 sm:$0xff]   ;;  %v5828_v9 = vld [vmem:[#allocation7 + $0xec] ss:$16 sps:$4 sm:$0xff]   ;;  %p6669_p9 = pnand %p6668_p13, %p7371_p7 }
  0xb5   : > { %v5741_v17 = vld [vmem:[#allocation7 + $0x264] ss:$16 sps:$4 sm:$0xff]   ;;  %v5744_v19 = vld [vmem:[#allocation7 + $0x260] ss:$16 sps:$4 sm:$0xff]  }
  0xb6   : > { %1782 = vmatpush1.bf16.msra.mxu0 %v5731_v10  ;;  %v5745_v20 = vld [vmem:[#allocation7 + $0x44] ss:$16 sps:$4 sm:$0xff]   ;;  %v5749_v22 = vld [vmem:[#allocation7 + $0x40] ss:$16 sps:$4 sm:$0xff]   ;;  %p6670_p11 = pneg %p6669_p9 }
  0xb7   : > { %1825 = vmatpush1.bf16.msra.mxu1 %v5732_v11  ;;  %1783 = vmatprep.subr.bf16.mxu0 %v5733_v12  ;;  %v5747_v21 = vld [vmem:[#allocation7 + $0x244] ss:$16 sps:$4 sm:$0xff]   ;;  %v5750_v23 = vld [vmem:[#allocation7 + $0x240] ss:$16 sps:$4 sm:$0xff]   ;;  %v6794_v11 = vmov 0  }
  0xb8   : > { %1826 = vmatprep.subr.bf16.mxu1 %v5735_v13  ;;  %v5751_v24 = vld [vmem:[#allocation7 + $0x24] ss:$16 sps:$4 sm:$0xff]   ;;  %v5755_v26 = vld [vmem:[#allocation7 + $0x20] ss:$16 sps:$4 sm:$0xff]   ;;  %v5826_v13 = vld [vmem:[#allocation7 + $0xe8] ss:$16 sps:$4 sm:$0xff]  }
  0xb9   : > { %v5753_v25 = vld [vmem:[#allocation7 + $0x224] ss:$16 sps:$4 sm:$0xff]   ;;  %v5756_v27 = vld [vmem:[#allocation7 + $0x220] ss:$16 sps:$4 sm:$0xff]  }
  0xba   : > { %1784 = vmatpush1.bf16.msra.mxu0 %v5737_v14  ;;  %v5757_v28 = vld [vmem:[#allocation7 + $0x4] ss:$16 sps:$4 sm:$0xff]   ;;  %v5761_v30 = vld [vmem:[#allocation7] ss:$16 sps:$4 sm:$0xff]  }
  0xbb   : > { %1827 = vmatpush1.bf16.msra.mxu1 %v5738_v15  ;;  %1785 = vmatprep.subr.bf16.mxu0 %v5739_v16  ;;  %v5759_v29 = vld [vmem:[#allocation7 + $0x204] ss:$16 sps:$4 sm:$0xff]   ;;  %v5762_v31 = vld [vmem:[#allocation7 + $0x200] ss:$16 sps:$4 sm:$0xff]   ;;  %v5835_v16 = vld [vmem:[#allocation7 + $0xcc] ss:$16 sps:$4 sm:$0xff]  }
  0xbc   : > { %1828 = vmatprep.subr.bf16.mxu1 %v5741_v17  ;;  %v5763_v32 = vld [vmem:[#allocation7 + $0x1e4] ss:$16 sps:$4 sm:$0xff]   ;;  %v5767_v34 = vld [vmem:[#allocation7 + $0x1e0] ss:$16 sps:$4 sm:$0xff]  }
  0xbd   : > { %v5765_v33 = vld [vmem:[#allocation7 + $0x3e4] ss:$16 sps:$4 sm:$0xff]   ;;  %v5768_v35 = vld [vmem:[#allocation7 + $0x3e0] ss:$16 sps:$4 sm:$0xff]  }
  0xbe   : > { %1786 = vmatpush1.bf16.msra.mxu0 %v5743_v18  ;;  %v5769_v36 = vld [vmem:[#allocation7 + $0x1c4] ss:$16 sps:$4 sm:$0xff]   ;;  %v5773_v38 = vld [vmem:[#allocation7 + $0x1c0] ss:$16 sps:$4 sm:$0xff]   ;;  %v5833_v18 = vld [vmem:[#allocation7 + $0xc8] ss:$16 sps:$4 sm:$0xff]  }
  0xbf   : > { %1829 = vmatpush1.bf16.msra.mxu1 %v5744_v19  ;;  %1787 = vmatprep.subr.bf16.mxu0 %v5745_v20  ;;  %v5771_v37 = vld [vmem:[#allocation7 + $0x3c4] ss:$16 sps:$4 sm:$0xff]   ;;  %v5774_v39 = vld [vmem:[#allocation7 + $0x3c0] ss:$16 sps:$4 sm:$0xff]   ;;  %v5841_v20 = vld [vmem:[#allocation7 + $0xac] ss:$16 sps:$4 sm:$0xff]  }
  0xc0   : > { %1830 = vmatprep.subr.bf16.mxu1 %v5747_v21  ;;  %v5775_v40 = vld [vmem:[#allocation7 + $0x1a4] ss:$16 sps:$4 sm:$0xff]   ;;  %v5779_v42 = vld [vmem:[#allocation7 + $0x1a0] ss:$16 sps:$4 sm:$0xff]  }
  0xc1   : > { %v5777_v41 = vld [vmem:[#allocation7 + $0x3a4] ss:$16 sps:$4 sm:$0xff]   ;;  %v5780_v43 = vld [vmem:[#allocation7 + $0x3a0] ss:$16 sps:$4 sm:$0xff]  }
  0xc2   : > { %1788 = vmatpush1.bf16.msra.mxu0 %v5749_v22  ;;  %v5781_v44 = vld [vmem:[#allocation7 + $0x184] ss:$16 sps:$4 sm:$0xff]   ;;  %v5785_v46 = vld [vmem:[#allocation7 + $0x180] ss:$16 sps:$4 sm:$0xff]   ;;  %v5839_v22 = vld [vmem:[#allocation7 + $0xa8] ss:$16 sps:$4 sm:$0xff]  }
  0xc3   : > { %1831 = vmatpush1.bf16.msra.mxu1 %v5750_v23  ;;  %1789 = vmatprep.subr.bf16.mxu0 %v5751_v24  ;;  %v5783_v45 = vld [vmem:[#allocation7 + $0x384] ss:$16 sps:$4 sm:$0xff]   ;;  %v5786_v47 = vld [vmem:[#allocation7 + $0x380] ss:$16 sps:$4 sm:$0xff]   ;;  %v5847_v24 = vld [vmem:[#allocation7 + $0x8c] ss:$16 sps:$4 sm:$0xff]  }
  0xc4   : > { %1832 = vmatprep.subr.bf16.mxu1 %v5753_v25  ;;  %v5787_v48 = vld [vmem:[#allocation7 + $0x164] ss:$16 sps:$4 sm:$0xff]   ;;  %v5791_v52 = vld [vmem:[#allocation7 + $0x160] ss:$16 sps:$4 sm:$0xff]  }
  0xc5   : > { %v7111_v49 = vld [vmem:[%s7084_s6 + $0x4] ss:$28 sps:$4 sm:$0xff]   ;;  %v7114_v51 = vld [vmem:[%s7084_s6 + $0xc] ss:$28 sps:$4 sm:$0xff]   ;;  %v5832_v14 = vld [vmem:[%s7084_s6 + $0x18] ss:$28 sps:$4 sm:$0xff]  }
  0xc6   : > { %1790 = vmatpush1.bf16.msra.mxu0 %v5755_v26  ;;  %v5789_v50 = vld [vmem:[#allocation7 + $0x364] ss:$16 sps:$4 sm:$0xff]   ;;  %1809 = vmatprep.mubr.bf16.mxu0 %v7111_v49  ;;  %v5792_v53 = vld [vmem:[#allocation7 + $0x360] ss:$16 sps:$4 sm:$0xff]   ;;  %v5845_v26 = vld [vmem:[#allocation7 + $0x88] ss:$16 sps:$4 sm:$0xff]  }
  0xc7   : > { %1833 = vmatpush1.bf16.msra.mxu1 %v5756_v27  ;;  %1791 = vmatprep.subr.bf16.mxu0 %v5757_v28  ;;  %v5793_v54 = vld [vmem:[#allocation7 + $0x144] ss:$16 sps:$4 sm:$0xff]   ;;  %v5797_v56 = vld [vmem:[#allocation7 + $0x140] ss:$16 sps:$4 sm:$0xff]   ;;  %v5853_v28 = vld [vmem:[#allocation7 + $0x6c] ss:$16 sps:$4 sm:$0xff]  }
  0xc8   : > { %1834 = vmatprep.subr.bf16.mxu1 %v5759_v29  ;;  %1852 = vmatprep.mubr.bf16.mxu1 %v7114_v51  ;;  %v5795_v55 = vld [vmem:[#allocation7 + $0x344] ss:$16 sps:$4 sm:$0xff]   ;;  %v5798_v57 = vld [vmem:[#allocation7 + $0x340] ss:$16 sps:$4 sm:$0xff]  }
  0xc9   : > { %v5799_v58 = vld [vmem:[#allocation7 + $0x124] ss:$16 sps:$4 sm:$0xff]   ;;  %v5803_v60 = vld [vmem:[#allocation7 + $0x120] ss:$16 sps:$4 sm:$0xff]  }
  0xca   : > { %1792 = vmatpush1.bf16.msra.mxu0 %v5761_v30  ;;  %v5801_v59 = vld [vmem:[#allocation7 + $0x324] ss:$16 sps:$4 sm:$0xff]   ;;  %v5804_v61 = vld [vmem:[#allocation7 + $0x320] ss:$16 sps:$4 sm:$0xff]   ;;  %v5851_v30 = vld [vmem:[#allocation7 + $0x68] ss:$16 sps:$4 sm:$0xff]  }
  0xcb   : > { %1835 = vmatpush1.bf16.msra.mxu1 %v5762_v31  ;;  %1793 = vmatprep.subr.bf16.mxu0 %v5763_v32  ;;  %v5805_v62 = vld [vmem:[#allocation7 + $0x104] ss:$16 sps:$4 sm:$0xff]   ;;  %v5809_v0 = vld [vmem:[#allocation7 + $0x100] ss:$16 sps:$4 sm:$0xff]   ;;  %v5859_v32 = vld [vmem:[#allocation7 + $0x4c] ss:$16 sps:$4 sm:$0xff]  }
  0xcc   : > { %1836 = vmatprep.subr.bf16.mxu1 %v5765_v33  ;;  %v5807_v63 = vld [vmem:[#allocation7 + $0x304] ss:$16 sps:$4 sm:$0xff]   ;;  %v5810_v1 = vld [vmem:[#allocation7 + $0x300] ss:$16 sps:$4 sm:$0xff]  }
  0xcd   : > { %v5819_v2 = vld [vmem:[#allocation7 + $0x4e4] ss:$16 sps:$4 sm:$0xff]   ;;  %v5817_v6 = vld [vmem:[#allocation7 + $0x4e0] ss:$16 sps:$4 sm:$0xff]  }
  0xce   : > { %1794 = vmatpush2.bf16.msra.mxu0 %v5767_v34  ;;  %v5822_v3 = vld [vmem:[#allocation7 + $0x604] ss:$16 sps:$4 sm:$0xff]   ;;  %v5820_v7 = vld [vmem:[#allocation7 + $0x600] ss:$16 sps:$4 sm:$0xff]  }
  0xcf   : > { %1837 = vmatpush2.bf16.msra.mxu1 %v5768_v35  ;;  %1795 = vmatprep.subr.bf16.mxu0 %v5769_v36  ;;  %v7119_v4 = vld [vmem:[%s7084_s6] ss:$28 sps:$4 sm:$0xff]   ;;  %v5814_v5 = vld [vmem:[%s7084_s6 + $0x8] ss:$28 sps:$4 sm:$0xff]   ;;  %v7128_v33 = vld [vmem:[%s7084_s6 + $0x14] ss:$28 sps:$4 sm:$0xff]  }
  0xd0   : > { %1838 = vmatprep.subr.bf16.mxu1 %v5771_v37  ;;  %v5825_v8 = vld [vmem:[#allocation7 + $0x4c4] ss:$16 sps:$4 sm:$0xff]   ;;  %v5823_v10 = vld [vmem:[#allocation7 + $0x4c0] ss:$16 sps:$4 sm:$0xff]   ;;  %v5857_v35 = vld [vmem:[#allocation7 + $0x48] ss:$16 sps:$4 sm:$0xff]  }
  0xd1   : > { %v5831_v12 = vld [vmem:[#allocation7 + $0x4a4] ss:$16 sps:$4 sm:$0xff]   ;;  %v5829_v15 = vld [vmem:[#allocation7 + $0x4a0] ss:$16 sps:$4 sm:$0xff]   ;;  %v5865_v37 = vld [vmem:[#allocation7 + $0x2c] ss:$16 sps:$4 sm:$0xff]  }
  0xd2   : > { %1796 = vmatpush2.bf16.msra.mxu0 %v5773_v38  ;;  %v5838_v17 = vld [vmem:[#allocation7 + $0x484] ss:$16 sps:$4 sm:$0xff]   ;;  %v5836_v19 = vld [vmem:[#allocation7 + $0x480] ss:$16 sps:$4 sm:$0xff]  }
  0xd3   : > { %1839 = vmatpush2.bf16.msra.mxu1 %v5774_v39  ;;  %1797 = vmatprep.subr.bf16.mxu0 %v5775_v40  ;;  %v5844_v21 = vld [vmem:[#allocation7 + $0x464] ss:$16 sps:$4 sm:$0xff]   ;;  %v5842_v23 = vld [vmem:[#allocation7 + $0x460] ss:$16 sps:$4 sm:$0xff]   ;;  %v5863_v39 = vld [vmem:[#allocation7 + $0x28] ss:$16 sps:$4 sm:$0xff]  }
  0xd4   : > { %1840 = vmatprep.subr.bf16.mxu1 %v5777_v41  ;;  %v5850_v25 = vld [vmem:[#allocation7 + $0x444] ss:$16 sps:$4 sm:$0xff]   ;;  %v5848_v27 = vld [vmem:[#allocation7 + $0x440] ss:$16 sps:$4 sm:$0xff]   ;;  %v5871_v41 = vld [vmem:[#allocation7 + $0xc] ss:$16 sps:$4 sm:$0xff]  }
  0xd5   : > { %v5856_v29 = vld [vmem:[#allocation7 + $0x424] ss:$16 sps:$4 sm:$0xff]   ;;  %v5854_v31 = vld [vmem:[#allocation7 + $0x420] ss:$16 sps:$4 sm:$0xff]  }
  0xd6   : > { %1798 = vmatpush2.bf16.msra.mxu0 %v5779_v42  ;;  %v5862_v34 = vld [vmem:[#allocation7 + $0x404] ss:$16 sps:$4 sm:$0xff]   ;;  %v5860_v36 = vld [vmem:[#allocation7 + $0x400] ss:$16 sps:$4 sm:$0xff]  }
  0xd7   : > { %1841 = vmatpush2.bf16.msra.mxu1 %v5780_v43  ;;  %1799 = vmatprep.subr.bf16.mxu0 %v5781_v44  ;;  %v5868_v38 = vld [vmem:[#allocation7 + $0x5e4] ss:$16 sps:$4 sm:$0xff]   ;;  %v5866_v40 = vld [vmem:[#allocation7 + $0x5e0] ss:$16 sps:$4 sm:$0xff]   ;;  %v5869_v43 = vld [vmem:[#allocation7 + $0x8] ss:$16 sps:$4 sm:$0xff]  }
  0xd8   : > { %1842 = vmatprep.subr.bf16.mxu1 %v5783_v45  ;;  %v5874_v42 = vld [vmem:[#allocation7 + $0x5c4] ss:$16 sps:$4 sm:$0xff]   ;;  %v5872_v44 = vld [vmem:[#allocation7 + $0x5c0] ss:$16 sps:$4 sm:$0xff]   ;;  %v5877_v45 = vld [vmem:[#allocation7 + $0x1ec] ss:$16 sps:$4 sm:$0xff]  }
  0xda   : > { %1800 = vmatpush2.bf16.msra.mxu0 %v5785_v46  ;;  %v5880_v46 = vld [vmem:[#allocation7 + $0x5a4] ss:$16 sps:$4 sm:$0xff]  }
  0xdb   : > { %1843 = vmatpush2.bf16.msra.mxu1 %v5786_v47  ;;  %1801 = vmatprep.subr.bf16.mxu0 %v5787_v48  ;;  %v5875_v47 = vld [vmem:[#allocation7 + $0x1e8] ss:$16 sps:$4 sm:$0xff]   ;;  %v5878_v48 = vld [vmem:[#allocation7 + $0x5a0] ss:$16 sps:$4 sm:$0xff]  }
  0xdc   : > { %1844 = vmatprep.subr.bf16.mxu1 %v5789_v50  ;;  %v5886_v50 = vld [vmem:[#allocation7 + $0x584] ss:$16 sps:$4 sm:$0xff]  }
  0xde   : > { %1802 = vmatpush2.bf16.msra.mxu0 %v5791_v52  ;;  %v5881_v52 = vld [vmem:[#allocation7 + $0x1c8] ss:$16 sps:$4 sm:$0xff]  }
  0xdf   : > { %1845 = vmatpush2.bf16.msra.mxu1 %v5792_v53  ;;  %1803 = vmatprep.subr.bf16.mxu0 %v5793_v54  ;;  %v5884_v53 = vld [vmem:[#allocation7 + $0x580] ss:$16 sps:$4 sm:$0xff]   ;;  %v5889_v54 = vld [vmem:[#allocation7 + $0x1ac] ss:$16 sps:$4 sm:$0xff]  }
  0xe0   : > { %1846 = vmatprep.subr.bf16.mxu1 %v5795_v55  ;;  %v5892_v55 = vld [vmem:[#allocation7 + $0x564] ss:$16 sps:$4 sm:$0xff]  }
  0xe2   : > { %1804 = vmatpush2.bf16.msra.mxu0 %v5797_v56  ;;  %v5887_v56 = vld [vmem:[#allocation7 + $0x1a8] ss:$16 sps:$4 sm:$0xff]  }
  0xe3   : > { %1847 = vmatpush2.bf16.msra.mxu1 %v5798_v57  ;;  %1805 = vmatprep.subr.bf16.mxu0 %v5799_v58  ;;  %v5890_v57 = vld [vmem:[#allocation7 + $0x560] ss:$16 sps:$4 sm:$0xff]   ;;  %v5895_v58 = vld [vmem:[#allocation7 + $0x18c] ss:$16 sps:$4 sm:$0xff]  }
  0xe4   : > { %1848 = vmatprep.subr.bf16.mxu1 %v5801_v59  ;;  %v5898_v59 = vld [vmem:[#allocation7 + $0x544] ss:$16 sps:$4 sm:$0xff]  }
  0xe6   : > { %1806 = vmatpush2.bf16.msra.mxu0 %v5803_v60  ;;  %v5893_v60 = vld [vmem:[#allocation7 + $0x188] ss:$16 sps:$4 sm:$0xff]  }
  0xe7   : > { %1849 = vmatpush2.bf16.msra.mxu1 %v5804_v61  ;;  %1807 = vmatprep.subr.bf16.mxu0 %v5805_v62  ;;  %v5896_v61 = vld [vmem:[#allocation7 + $0x540] ss:$16 sps:$4 sm:$0xff]   ;;  %v5901_v62 = vld [vmem:[#allocation7 + $0x16c] ss:$16 sps:$4 sm:$0xff]  }
  0xe8   : > { %1850 = vmatprep.subr.bf16.mxu1 %v5807_v63  ;;  %v5904_v63 = vld [vmem:[#allocation7 + $0x524] ss:$16 sps:$4 sm:$0xff]  }
  0xea   : > { %1808 = vmatpush2.bf16.msra.mxu0 %v5809_v0  ;;  %v5899_v0 = vld [vmem:[#allocation7 + $0x168] ss:$16 sps:$4 sm:$0xff]  }
  0xeb   : > { %1851 = vmatpush2.bf16.msra.mxu1 %v5810_v1  ;;  %1863 = vmatprep.subr.bf16.mxu0 %v5819_v2  ;;  %v5902_v1 = vld [vmem:[#allocation7 + $0x520] ss:$16 sps:$4 sm:$0xff]   ;;  %v5907_v2 = vld [vmem:[#allocation7 + $0x14c] ss:$16 sps:$4 sm:$0xff]  }
  0xec   : > { %1920 = vmatprep.subr.bf16.mxu1 %v5822_v3  ;;  %v5910_v3 = vld [vmem:[#allocation7 + $0x504] ss:$16 sps:$4 sm:$0xff]  }
  0xed   : > { %1810 = vmatmul.mubr.bf16.vlgmr.msra.gmra.mxu0 %v7119_v4 }
  0xee   : > { %1853 = vmatmul.mubr.bf16.vlgmr.msra.gmra.mxu1 %v5814_v5  ;;  %1864 = vmatpush1.bf16.msra.mxu0 %v5817_v6  ;;  %v5905_v5 = vld [vmem:[#allocation7 + $0x148] ss:$16 sps:$4 sm:$0xff]   ;;  %v5908_v6 = vld [vmem:[#allocation7 + $0x500] ss:$16 sps:$4 sm:$0xff]  }
  0xef   : > { %1921 = vmatpush1.bf16.msra.mxu1 %v5820_v7  ;;  %1865 = vmatprep.subr.bf16.mxu0 %v5825_v8  ;;  %v5916_v7 = vld [vmem:[#allocation7 + $0x12c] ss:$16 sps:$4 sm:$0xff]  }
  0xf0   : > { %1938 = vmatprep.mubr.bf16.mxu1 %v6794_v11  ;;  %1949 = vmatprep.subr.bf16.mxu1 %v5828_v9  ;;  %v5919_v8 = vld [vmem:[#allocation7 + $0x2ec] ss:$16 sps:$4 sm:$0xff]  }
  0xf1   : > { %1895 = vmatprep.mubr.bf16.mxu0 %v7128_v33  ;;  %v7132_v9 = vld [vmem:[%s7084_s6 + $0x10] ss:$28 sps:$4 sm:$0xff]  }
  0xf2   : > { %1866 = vmatpush1.bf16.msra.mxu0 %v5823_v10  ;;  %v5914_v10 = vld [vmem:[#allocation7 + $0x128] ss:$16 sps:$4 sm:$0xff]  }
  0xf3   : > { %1867 = vmatprep.subr.bf16.mxu0 %v5831_v12  ;;  %v5917_v12 = vld [vmem:[#allocation7 + $0x2e8] ss:$16 sps:$4 sm:$0xff]  }
  0xf6   : > { %5169 = vmatmul.mubr.msk.bf16.vlgmr.msra.gmra.mxu1 %vm1773_vm0, %v5832_v14  ;;  %1868 = vmatpush1.bf16.msra.mxu0 %v5829_v15  ;;  %v5925_v14 = vld [vmem:[#allocation7 + $0x2cc] ss:$16 sps:$4 sm:$0xff]   ;;  %v5920_v15 = vld [vmem:[#allocation7 + $0x108] ss:$16 sps:$4 sm:$0xff]  }
  0xf7   : > { %1950 = vmatpush1.bf16.msra.mxu1 %v5826_v13  ;;  %1869 = vmatprep.subr.bf16.mxu0 %v5838_v17  ;;  %v5922_v13 = vld [vmem:[#allocation7 + $0x10c] ss:$16 sps:$4 sm:$0xff]  }
  0xf8   : > { %1951 = vmatprep.subr.bf16.mxu1 %v5835_v16  ;;  %1981 = vmatprep.mubr.bf16.mxu1 %v7111_v49  ;;  %v5883_v49 = vld [vmem:[#allocation7 + $0x1cc] ss:$16 sps:$4 sm:$0xff]   ;;  %v5923_v16 = vld [vmem:[#allocation7 + $0x2c8] ss:$16 sps:$4 sm:$0xff]  }
  0xf9   : > { %v5928_v17 = vld [vmem:[#allocation7 + $0x4ec] ss:$16 sps:$4 sm:$0xff]  }
  0xfa   : > { %1870 = vmatpush1.bf16.msra.mxu0 %v5836_v19  ;;  %v5926_v19 = vld [vmem:[#allocation7 + $0x4e8] ss:$16 sps:$4 sm:$0xff]  }
  0xfb   : > { %1952 = vmatpush1.bf16.msra.mxu1 %v5833_v18  ;;  %1871 = vmatprep.subr.bf16.mxu0 %v5844_v21  ;;  %v5931_v18 = vld [vmem:[#allocation7 + $0x2ac] ss:$16 sps:$4 sm:$0xff]  }
  0xfc   : > { %1953 = vmatprep.subr.bf16.mxu1 %v5841_v20  ;;  %v5929_v20 = vld [vmem:[#allocation7 + $0x2a8] ss:$16 sps:$4 sm:$0xff]   ;;  %v5934_v21 = vld [vmem:[#allocation7 + $0x4cc] ss:$16 sps:$4 sm:$0xff]  }
  0xfe   : > { %1872 = vmatpush1.bf16.msra.mxu0 %v5842_v23  ;;  %v5932_v23 = vld [vmem:[#allocation7 + $0x4c8] ss:$16 sps:$4 sm:$0xff]  }
  0xff   : > { %1954 = vmatpush1.bf16.msra.mxu1 %v5839_v22  ;;  %1873 = vmatprep.subr.bf16.mxu0 %v5850_v25  ;;  %v5937_v22 = vld [vmem:[#allocation7 + $0x28c] ss:$16 sps:$4 sm:$0xff]  }
 0x100   : > { %1955 = vmatprep.subr.bf16.mxu1 %v5847_v24  ;;  %v5935_v24 = vld [vmem:[#allocation7 + $0x288] ss:$16 sps:$4 sm:$0xff]   ;;  %v5940_v25 = vld [vmem:[#allocation7 + $0x4ac] ss:$16 sps:$4 sm:$0xff]  }
 0x102   : > { %1874 = vmatpush1.bf16.msra.mxu0 %v5848_v27  ;;  %v5938_v27 = vld [vmem:[#allocation7 + $0x4a8] ss:$16 sps:$4 sm:$0xff]  }
 0x103   : > { %1956 = vmatpush1.bf16.msra.mxu1 %v5845_v26  ;;  %1875 = vmatprep.subr.bf16.mxu0 %v5856_v29  ;;  %v5943_v26 = vld [vmem:[#allocation7 + $0x26c] ss:$16 sps:$4 sm:$0xff]  }
 0x104   : > { %1957 = vmatprep.subr.bf16.mxu1 %v5853_v28  ;;  %v5941_v28 = vld [vmem:[#allocation7 + $0x268] ss:$16 sps:$4 sm:$0xff]   ;;  %v5949_v29 = vld [vmem:[#allocation7 + $0x24c] ss:$16 sps:$4 sm:$0xff]  }
 0x106   : > { %1876 = vmatpush1.bf16.msra.mxu0 %v5854_v31  ;;  %v5947_v31 = vld [vmem:[#allocation7 + $0x248] ss:$16 sps:$4 sm:$0xff]  }
 0x107   : > { %1958 = vmatpush1.bf16.msra.mxu1 %v5851_v30  ;;  %1877 = vmatprep.subr.bf16.mxu0 %v5862_v34  ;;  %v5944_v30 = vld [vmem:[#allocation7 + $0x488] ss:$16 sps:$4 sm:$0xff]  }
 0x108   : > { %1959 = vmatprep.subr.bf16.mxu1 %v5859_v32  ;;  %v5952_v32 = vld [vmem:[#allocation7 + $0x46c] ss:$16 sps:$4 sm:$0xff]   ;;  %v5950_v34 = vld [vmem:[#allocation7 + $0x468] ss:$16 sps:$4 sm:$0xff]  }
 0x10a   : > { %1878 = vmatpush1.bf16.msra.mxu0 %v5860_v36  ;;  %v5958_v36 = vld [vmem:[#allocation7 + $0x44c] ss:$16 sps:$4 sm:$0xff]  }
 0x10b   : > { %1960 = vmatpush1.bf16.msra.mxu1 %v5857_v35  ;;  %1879 = vmatprep.subr.bf16.mxu0 %v5868_v38  ;;  %v5953_v35 = vld [vmem:[#allocation7 + $0x228] ss:$16 sps:$4 sm:$0xff]  }
 0x10c   : > { %1961 = vmatprep.subr.bf16.mxu1 %v5865_v37  ;;  %v5961_v37 = vld [vmem:[#allocation7 + $0x20c] ss:$16 sps:$4 sm:$0xff]   ;;  %v5959_v38 = vld [vmem:[#allocation7 + $0x208] ss:$16 sps:$4 sm:$0xff]  }
 0x10e   : > { %1880 = vmatpush2.bf16.msra.mxu0 %v5866_v40  ;;  %v5967_v40 = vld [vmem:[#allocation7 + $0x3ec] ss:$16 sps:$4 sm:$0xff]  }
 0x10f   : > { %1962 = vmatpush1.bf16.msra.mxu1 %v5863_v39  ;;  %1881 = vmatprep.subr.bf16.mxu0 %v5874_v42  ;;  %v5964_v39 = vld [vmem:[#allocation7 + $0x42c] ss:$16 sps:$4 sm:$0xff]   ;;  %v5965_v42 = vld [vmem:[#allocation7 + $0x3e8] ss:$16 sps:$4 sm:$0xff]  }
 0x110   : > { %1963 = vmatprep.subr.bf16.mxu1 %v5871_v41  ;;  %v5962_v41 = vld [vmem:[#allocation7 + $0x428] ss:$16 sps:$4 sm:$0xff]  }
 0x112   : > { %1882 = vmatpush2.bf16.msra.mxu0 %v5872_v44  ;;  %v5973_v44 = vld [vmem:[#allocation7 + $0x3cc] ss:$16 sps:$4 sm:$0xff]  }
 0x113   : > { %1964 = vmatpush1.bf16.msra.mxu1 %v5869_v43  ;;  %1883 = vmatprep.subr.bf16.mxu0 %v5880_v46  ;;  %v5970_v43 = vld [vmem:[#allocation7 + $0x40c] ss:$16 sps:$4 sm:$0xff]   ;;  %v5971_v46 = vld [vmem:[#allocation7 + $0x3c8] ss:$16 sps:$4 sm:$0xff]  }
 0x114   : > { %1965 = vmatprep.subr.bf16.mxu1 %v5877_v45  ;;  %v5968_v45 = vld [vmem:[#allocation7 + $0x408] ss:$16 sps:$4 sm:$0xff]  }
 0x116   : > { %1884 = vmatpush2.bf16.msra.mxu0 %v5878_v48  ;;  %v5979_v48 = vld [vmem:[#allocation7 + $0x3ac] ss:$16 sps:$4 sm:$0xff]  }
 0x117   : > { %1966 = vmatpush2.bf16.msra.mxu1 %v5875_v47  ;;  %1885 = vmatprep.subr.bf16.mxu0 %v5886_v50  ;;  %v5976_v47 = vld [vmem:[#allocation7 + $0x5ec] ss:$16 sps:$4 sm:$0xff]   ;;  %v5977_v50 = vld [vmem:[#allocation7 + $0x3a8] ss:$16 sps:$4 sm:$0xff]  }
 0x118   : > { %1967 = vmatprep.subr.bf16.mxu1 %v5883_v49  ;;  %v5974_v49 = vld [vmem:[#allocation7 + $0x5e8] ss:$16 sps:$4 sm:$0xff]  }
 0x11a   : > { %1886 = vmatpush2.bf16.msra.mxu0 %v5884_v53  ;;  %v5985_v53 = vld [vmem:[#allocation7 + $0x38c] ss:$16 sps:$4 sm:$0xff]  }
 0x11b   : > { %1968 = vmatpush2.bf16.msra.mxu1 %v5881_v52  ;;  %1887 = vmatprep.subr.bf16.mxu0 %v5892_v55  ;;  %v5982_v52 = vld [vmem:[#allocation7 + $0x5cc] ss:$16 sps:$4 sm:$0xff]   ;;  %v5983_v55 = vld [vmem:[#allocation7 + $0x388] ss:$16 sps:$4 sm:$0xff]  }
 0x11c   : > { %1969 = vmatprep.subr.bf16.mxu1 %v5889_v54  ;;  %v5980_v54 = vld [vmem:[#allocation7 + $0x5c8] ss:$16 sps:$4 sm:$0xff]  }
 0x11e   : > { %1888 = vmatpush2.bf16.msra.mxu0 %v5890_v57  ;;  %v5991_v57 = vld [vmem:[#allocation7 + $0x36c] ss:$16 sps:$4 sm:$0xff]  }
 0x11f   : > { %1970 = vmatpush2.bf16.msra.mxu1 %v5887_v56  ;;  %1889 = vmatprep.subr.bf16.mxu0 %v5898_v59  ;;  %v5988_v56 = vld [vmem:[#allocation7 + $0x5ac] ss:$16 sps:$4 sm:$0xff]   ;;  %v5989_v59 = vld [vmem:[#allocation7 + $0x368] ss:$16 sps:$4 sm:$0xff]  }
 0x120   : > { %1971 = vmatprep.subr.bf16.mxu1 %v5895_v58  ;;  %v5986_v58 = vld [vmem:[#allocation7 + $0x5a8] ss:$16 sps:$4 sm:$0xff]  }
 0x122   : > { %1890 = vmatpush2.bf16.msra.mxu0 %v5896_v61  ;;  %v5997_v61 = vld [vmem:[#allocation7 + $0x34c] ss:$16 sps:$4 sm:$0xff]  }
 0x123   : > { %1972 = vmatpush2.bf16.msra.mxu1 %v5893_v60  ;;  %1891 = vmatprep.subr.bf16.mxu0 %v5904_v63  ;;  %v5994_v60 = vld [vmem:[#allocation7 + $0x58c] ss:$16 sps:$4 sm:$0xff]   ;;  %v5995_v63 = vld [vmem:[#allocation7 + $0x348] ss:$16 sps:$4 sm:$0xff]  }
 0x124   : > { %1973 = vmatprep.subr.bf16.mxu1 %v5901_v62  ;;  %v5992_v62 = vld [vmem:[#allocation7 + $0x588] ss:$16 sps:$4 sm:$0xff]  }
 0x126   : > { %1892 = vmatpush2.bf16.msra.mxu0 %v5902_v1  ;;  %v6003_v1 = vld [vmem:[#allocation7 + $0x32c] ss:$16 sps:$4 sm:$0xff]  }
 0x127   : > { %1974 = vmatpush2.bf16.msra.mxu1 %v5899_v0  ;;  %1893 = vmatprep.subr.bf16.mxu0 %v5910_v3  ;;  %v6000_v0 = vld [vmem:[#allocation7 + $0x56c] ss:$16 sps:$4 sm:$0xff]   ;;  %v6001_v3 = vld [vmem:[#allocation7 + $0x328] ss:$16 sps:$4 sm:$0xff]  }
 0x128   : > { %1975 = vmatprep.subr.bf16.mxu1 %v5907_v2  ;;  %v5998_v2 = vld [vmem:[#allocation7 + $0x568] ss:$16 sps:$4 sm:$0xff]  }
 0x12a   : > { %1894 = vmatpush2.bf16.msra.mxu0 %v5908_v6  ;;  %v6009_v6 = vld [vmem:[#allocation7 + $0x30c] ss:$16 sps:$4 sm:$0xff]  }
 0x12b   : > { %1976 = vmatpush2.bf16.msra.mxu1 %v5905_v5  ;;  %1992 = vmatprep.subr.bf16.mxu0 %v5919_v8  ;;  %v6006_v5 = vld [vmem:[#allocation7 + $0x54c] ss:$16 sps:$4 sm:$0xff]   ;;  %v6007_v8 = vld [vmem:[#allocation7 + $0x308] ss:$16 sps:$4 sm:$0xff]  }
 0x12c   : > { %1977 = vmatprep.subr.bf16.mxu1 %v5916_v7  ;;  %v6004_v7 = vld [vmem:[#allocation7 + $0x548] ss:$16 sps:$4 sm:$0xff]  }
 0x12d   : > { %1896 = vmatmul.mubr.bf16.vlgmr.msra.gmra.mxu0 %v7132_v9 }
 0x12e   : > { %1993 = vmatpush1.bf16.msra.mxu0 %v5917_v12  ;;  %2024 = vmatprep.mubr.bf16.mxu0 %v7114_v51  ;;  %v5946_v51 = vld [vmem:[#allocation7 + $0x48c] ss:$16 sps:$4 sm:$0xff]  }
 0x12f   : > { %1978 = vmatpush2.bf16.msra.mxu1 %v5914_v10  ;;  %1994 = vmatprep.subr.bf16.mxu0 %v5925_v14  ;;  %v6012_v10 = vld [vmem:[#allocation7 + $0x52c] ss:$16 sps:$4 sm:$0xff]   ;;  %v6013_v14 = vld [vmem:[#allocation7 + $0x608] ss:$16 sps:$4 sm:$0xff]  }
 0x130   : > { %1979 = vmatprep.subr.bf16.mxu1 %v5922_v13  ;;  %v6015_v12 = vld [vmem:[#allocation7 + $0x60c] ss:$16 sps:$4 sm:$0xff]   ;;  %v6010_v13 = vld [vmem:[#allocation7 + $0x528] ss:$16 sps:$4 sm:$0xff]  }
 0x132   : > { %1995 = vmatpush1.bf16.msra.mxu0 %v5923_v16  ;;  %v6019_v16 = vld [vmem:[#allocation8 + $0x78] sm:$0xff]  }
 0x133   : > { %1980 = vmatpush2.bf16.msra.mxu1 %v5920_v15  ;;  %1996 = vmatprep.subr.bf16.mxu0 %v5931_v18  ;;  %v6018_v15 = vld [vmem:[#allocation7 + $0x50c] ss:$16 sps:$4 sm:$0xff]   ;;  %v6016_v18 = vld [vmem:[#allocation7 + $0x508] ss:$16 sps:$4 sm:$0xff]  }
 0x134   : > { %2035 = vmatprep.subr.bf16.mxu1 %v5928_v17  ;;  %v6479_v17 = vld [vmem:[%s7084_s6 + $0x8] ss:$28 sps:$4 sm:$0xff]  }
 0x136   : > { %1982 = vmatmul.mubr.bf16.vlgmr.msra.gmra.mxu1 %v7119_v4  ;;  %1997 = vmatpush1.bf16.msra.mxu0 %v5929_v20  ;;  %v5955_v4 = vld [vmem:[#allocation7 + $0x22c] ss:$16 sps:$4 sm:$0xff]   ;;  %v6021_v20 = vld [vmem:[#allocation8 + $0x70] sm:$0xff]  }
 0x137   : > { %2036 = vmatpush1.bf16.msra.mxu1 %v5926_v19  ;;  %1998 = vmatprep.subr.bf16.mxu0 %v5937_v22  ;;  %v6020_v19 = vld [vmem:[#allocation8 + $0x38] sm:$0xff]  }
 0x138   : > { %2037 = vmatprep.subr.bf16.mxu1 %v5934_v21  ;;  %2067 = vmatprep.mubr.bf16.mxu1 %v7128_v33  ;;  %v5956_v33 = vld [vmem:[#allocation7 + $0x448] ss:$16 sps:$4 sm:$0xff]   ;;  %v6022_v21 = vld [vmem:[#allocation8 + $0x30] sm:$0xff]  }
 0x139   : > { %v6480_v22 = vld [vmem:[%s7084_s6 + $0x18] ss:$28 sps:$4 sm:$0xff]  }
 0x13a   : > { %1999 = vmatpush1.bf16.msra.mxu0 %v5935_v24  ;;  %v6024_v24 = vld [vmem:[#allocation8 + $0x28] sm:$0xff]  }
 0x13b   : > { %2038 = vmatpush1.bf16.msra.mxu1 %v5932_v23  ;;  %2000 = vmatprep.subr.bf16.mxu0 %v5943_v26  ;;  %v6023_v23 = vld [vmem:[#allocation8 + $0x68] sm:$0xff]   ;;  %v6026_v26 = vld [vmem:[#allocation8 + $0x20] sm:$0xff]  }
 0x13c   : > { %2039 = vmatprep.subr.bf16.mxu1 %v5940_v25  ;;  %v6025_v25 = vld [vmem:[#allocation8 + $0x60] sm:$0xff]  }
 0x13e   : > { %2001 = vmatpush1.bf16.msra.mxu0 %v5941_v28  ;;  %v6036_v28 = vld [vmem:[#allocation8 + $0xb8] sm:$0xff]  }
 0x13f   : > { %2040 = vmatpush1.bf16.msra.mxu1 %v5938_v27  ;;  %2002 = vmatprep.subr.bf16.mxu0 %v5949_v29  ;;  %v6035_v27 = vld [vmem:[#allocation8 + $0xf8] sm:$0xff]  }
 0x140   : > { %2041 = vmatprep.subr.bf16.mxu1 %v5946_v51  ;;  %v6037_v51 = vld [vmem:[#allocation8 + $0xf0] sm:$0xff]   ;;  %v6027_v29 = vld [vmem:[#allocation8 + $0x58] sm:$0xff]  }
 0x142   : > { %2003 = vmatpush1.bf16.msra.mxu0 %v5947_v31  ;;  %v6028_v31 = vld [vmem:[#allocation8 + $0x18] sm:$0xff]  }
 0x143   : > { %2042 = vmatpush1.bf16.msra.mxu1 %v5944_v30  ;;  %2004 = vmatprep.subr.bf16.mxu0 %v5955_v4  ;;  %v6038_v30 = vld [vmem:[#allocation8 + $0xb0] sm:$0xff]  }
 0x144   : > { %2043 = vmatprep.subr.bf16.mxu1 %v5952_v32  ;;  %v6029_v32 = vld [vmem:[#allocation8 + $0x50] sm:$0xff]  }
 0x145   : > { %v6030_v4 = vld [vmem:[#allocation8 + $0x10] sm:$0xff]  }
 0x146   : > { %2005 = vmatpush1.bf16.msra.mxu0 %v5953_v35  ;;  %v6032_v35 = vld [vmem:[#allocation8 + $0x8] sm:$0xff]  }
 0x147   : > { %2044 = vmatpush1.bf16.msra.mxu1 %v5950_v34  ;;  %2006 = vmatprep.subr.bf16.mxu0 %v5961_v37  ;;  %v6031_v34 = vld [vmem:[#allocation8 + $0x48] sm:$0xff]   ;;  %v6034_v37 = vld [vmem:[#allocation8] sm:$0xff]  }
 0x148   : > { %2045 = vmatprep.subr.bf16.mxu1 %v5958_v36  ;;  %v6033_v36 = vld [vmem:[#allocation8 + $0x40] sm:$0xff]  }
 0x14a   : > { %2007 = vmatpush1.bf16.msra.mxu0 %v5959_v38  ;;  %v6041_v38 = vld [vmem:[#allocation8 + $0xe0] sm:$0xff]  }
 0x14b   : > { %2046 = vmatpush1.bf16.msra.mxu1 %v5956_v33  ;;  %2008 = vmatprep.subr.bf16.mxu0 %v5967_v40  ;;  %v6040_v33 = vld [vmem:[#allocation8 + $0xa8] sm:$0xff]   ;;  %v6043_v40 = vld [vmem:[#allocation8 + $0xd8] sm:$0xff]  }
 0x14c   : > { %2047 = vmatprep.subr.bf16.mxu1 %v5964_v39  ;;  %v6042_v39 = vld [vmem:[#allocation8 + $0xa0] sm:$0xff]  }
 0x14e   : > { %2009 = vmatpush2.bf16.msra.mxu0 %v5965_v42  ;;  %v6045_v42 = vld [vmem:[#allocation8 + $0xd0] sm:$0xff]  }
 0x14f   : > { %2048 = vmatpush1.bf16.msra.mxu1 %v5962_v41  ;;  %2010 = vmatprep.subr.bf16.mxu0 %v5973_v44  ;;  %v6044_v41 = vld [vmem:[#allocation8 + $0x98] sm:$0xff]   ;;  %v6047_v44 = vld [vmem:[#allocation8 + $0xc8] sm:$0xff]  }
 0x150   : > { %2049 = vmatprep.subr.bf16.mxu1 %v5970_v43  ;;  %v6046_v43 = vld [vmem:[#allocation8 + $0x90] sm:$0xff]  }
 0x152   : > { %2011 = vmatpush2.bf16.msra.mxu0 %v5971_v46  ;;  %v6049_v46 = vld [vmem:[#allocation8 + $0xc0] sm:$0xff]  }
 0x153   : > { %2050 = vmatpush1.bf16.msra.mxu1 %v5968_v45  ;;  %2012 = vmatprep.subr.bf16.mxu0 %v5979_v48  ;;  %v6048_v45 = vld [vmem:[#allocation8 + $0x88] sm:$0xff]  }
 0x154   : > { %2051 = vmatprep.subr.bf16.mxu1 %v5976_v47  ;;  %v6050_v47 = vld [vmem:[#allocation8 + $0x80] sm:$0xff]  }
 0x156   : > { %2013 = vmatpush2.bf16.msra.mxu0 %v5977_v50 }
 0x157   : > { %2052 = vmatpush2.bf16.msra.mxu1 %v5974_v49  ;;  %2014 = vmatprep.subr.bf16.mxu0 %v5985_v53  ;;  %v738_v49 = vlaneseq }
 0x158   : > { %2053 = vmatprep.subr.bf16.mxu1 %v5982_v52 }
 0x159   : > { %v7143_v52 = vshrl.u32 %v738_v49, 7 }
 0x15a   : > { %2015 = vmatpush2.bf16.msra.mxu0 %v5983_v55 }
 0x15b   : > { %2054 = vmatpush2.bf16.msra.mxu1 %v5980_v54  ;;  %2016 = vmatprep.subr.bf16.mxu0 %v5991_v57  ;;  %v7146_v55 = vsub.s32 1, %v7143_v52 }
 0x15c   : > { %2055 = vmatprep.subr.bf16.mxu1 %v5988_v56  ;;  %v7149_v56 = vsub.s32 0, %v7143_v52 }
 0x15e   : > { %2017 = vmatpush2.bf16.msra.mxu0 %v5989_v59 }
 0x15f   : > { %2056 = vmatpush2.bf16.msra.mxu1 %v5986_v58  ;;  %2018 = vmatprep.subr.bf16.mxu0 %v5997_v61  ;;  %v736_v58 = vld [vmem:[%s7322_s3] sm:$0xf] }
 0x160   : > { %2057 = vmatprep.subr.bf16.mxu1 %v5994_v60  ;;  %v745_v60 = vrot.slane %v736_v58, %v7146_v55  ;;  %v741_v61 = vrot.slane %v736_v58, %v7149_v56 }
 0x162   : > { %2019 = vmatpush2.bf16.msra.mxu0 %v5995_v63 }
 0x163   : > { %2058 = vmatpush2.bf16.msra.mxu1 %v5992_v62  ;;  %2020 = vmatprep.subr.bf16.mxu0 %v6003_v1 }
 0x164   : > { %2059 = vmatprep.subr.bf16.mxu1 %v6000_v0 }
 0x166   : > { %2021 = vmatpush2.bf16.msra.mxu0 %v6001_v3 }
 0x167   : > { %2060 = vmatpush2.bf16.msra.mxu1 %v5998_v2  ;;  %2022 = vmatprep.subr.bf16.mxu0 %v6009_v6 }
 0x168   : > { %2061 = vmatprep.subr.bf16.mxu1 %v6006_v5 }
 0x16a   : > { %2023 = vmatpush2.bf16.msra.mxu0 %v6007_v8 }
 0x16b   : > { %2062 = vmatpush2.bf16.msra.mxu1 %v6004_v7  ;;  %2092 = vmatprep.subr.bf16.mxu0 %v6015_v12 }
 0x16c   : > { %2063 = vmatprep.subr.bf16.mxu1 %v6012_v10 }
 0x16d   : > { %2025 = vmatmul.mubr.bf16.vlgmr.msra.gmra.mxu0 %v6479_v17 }
 0x16e   : > { %2093 = vmatpush1.bf16.msra.mxu0 %v6013_v14  ;;  %2110 = vmatprep.mubr.bf16.mxu0 %v6794_v11 }
 0x16f   : > { %2064 = vmatpush2.bf16.msra.mxu1 %v6010_v13  ;;  %5502 = vmatprep.subr.bf16.mxu0 %v6019_v16 }
 0x170   : > { %2065 = vmatprep.subr.bf16.mxu1 %v6018_v15 }
 0x173   : > { %2066 = vmatpush2.bf16.msra.mxu1 %v6016_v18 }
 0x174   : > { %5524 = vmatprep.subr.bf16.mxu1 %v6035_v27 }
 0x175   : > { %5170 = vmatmul.mubr.msk.bf16.vlgmr.msra.gmra.mxu0 %vm1773_vm0, %v6480_v22 }
 0x176   : > { %2068 = vmatmul.mubr.bf16.vlgmr.msra.gmra.mxu1 %v7132_v9  ;;  %5503 = vmatpush3.bf16.msra.mxu0 %v6020_v19  ;;  %v6039_v9 = vld [vmem:[#allocation8 + $0xe8] sm:$0xff]  }
 0x177   : > { %5504 = vmatprep.subr.bf16.mxu0 %v6021_v20  ;;  %5525 = vmatpush3.bf16.msra.mxu1 %v6036_v28 }
 0x178   : > { %5526 = vmatprep.subr.bf16.mxu1 %v6037_v51 }
 0x17a   : > { %5505 = vmatpush3.bf16.msra.mxu0 %v6022_v21 }
 0x17b   : > { %5506 = vmatprep.subr.bf16.mxu0 %v6023_v23  ;;  %5527 = vmatpush3.bf16.msra.mxu1 %v6038_v30 }
 0x17c   : > { %5528 = vmatprep.subr.bf16.mxu1 %v6039_v9 }
 0x17e   : > { %5507 = vmatpush3.bf16.msra.mxu0 %v6024_v24 }
 0x17f   : > { %5508 = vmatprep.subr.bf16.mxu0 %v6025_v25  ;;  %5529 = vmatpush3.bf16.msra.mxu1 %v6040_v33 }
 0x180   : > { %5530 = vmatprep.subr.bf16.mxu1 %v6041_v38 }
 0x182   : > { %5509 = vmatpush3.bf16.msra.mxu0 %v6026_v26 }
 0x183   : > { %5510 = vmatprep.subr.bf16.mxu0 %v6027_v29  ;;  %5531 = vmatpush3.bf16.msra.mxu1 %v6042_v39 }
 0x184   : > { %5532 = vmatprep.subr.bf16.mxu1 %v6043_v40 }
 0x186   : > { %5511 = vmatpush3.bf16.msra.mxu0 %v6028_v31 }
 0x187   : > { %5512 = vmatprep.subr.bf16.mxu0 %v6029_v32  ;;  %5533 = vmatpush3.bf16.msra.mxu1 %v6044_v41 }
 0x188   : > { %5534 = vmatprep.subr.bf16.mxu1 %v6045_v42 }
 0x18a   : > { %5513 = vmatpush3.bf16.msra.mxu0 %v6030_v4  ;;  %v7158_v4 = vsub.s32 3, %v7143_v52 }
 0x18b   : > { %5514 = vmatprep.subr.bf16.mxu0 %v6031_v34  ;;  %5535 = vmatpush3.bf16.msra.mxu1 %v6046_v43  ;;  %v7161_v34 = vsub.s32 2, %v7143_v52 }
 0x18c   : > { %5536 = vmatprep.subr.bf16.mxu1 %v6047_v44  ;;  %v753_v33 = vrot.slane %v736_v58, %v7158_v4 }
 0x18d   : > { %v749_v38 = vrot.slane %v736_v58, %v7161_v34 }
 0x18e   : > { %5515 = vmatpush3.bf16.msra.mxu0 %v6032_v35 }
 0x18f   : > { %5516 = vmatprep.subr.bf16.mxu0 %v6033_v36  ;;  %5537 = vmatpush3.bf16.msra.mxu1 %v6048_v45 }
 0x190   : > { %5538 = vmatprep.subr.bf16.mxu1 %v6049_v46 }
 0x192   : > { %5517 = vmatpush3.bf16.msra.mxu0 %v6034_v37 }
 0x193   : > { %5539 = vmatpush3.bf16.msra.mxu1 %v6050_v47 }
 0x1ad   : > { %v1811_v53 = vpop.f32.mrf.mxu0 }
 0x1ae   : > { %v1854_v48 = vpop.f32.mrf.mxu1  ;;  %v1812_v1 = vadd.f32 %v1811_v53, %v741_v61 }
 0x1af   : > { %v1813_v57 = vpop.f32.mrf.mxu0 }
 0x1b0   : > { %v1856_v50 = vpop.f32.mrf.mxu1  ;;  %v1814_v0 = vadd.f32 %v1813_v57, %v745_v60  ;;  %v1855_v10 = vadd.f32 %v1854_v48, %v1812_v1 }
 0x1b1   : > { %v1815_v62 = vpop.f32.mrf.mxu0 }
 0x1b2   : > { %v1858_v54 = vpop.f32.mrf.mxu1  ;;  %v1816_v3 = vadd.f32 %v1815_v62, %v741_v61  ;;  %v1857_v7 = vadd.f32 %v1856_v50, %v1814_v0 }
 0x1b3   : > { %v1817_v2 = vpop.f32.mrf.mxu0 }
 0x1b4   : > { %v1860_v59 = vpop.f32.mrf.mxu1  ;;  %v1818_v8 = vadd.f32 %v1817_v2, %v745_v60  ;;  %v1859_v13 = vadd.f32 %v1858_v54, %v1816_v3 }
 0x1b6   : > { %v1940_v63 = vpop.f32.mrf.mxu1  ;;  %v1861_v18 = vadd.f32 %v1860_v59, %v1818_v8 }
 0x1b8   : > { %v1942_v5 = vpop.f32.mrf.mxu1 }
 0x1ba   : > { %v1944_v15 = vpop.f32.mrf.mxu1 }
 0x1bc   : > { %v1946_v24 = vpop.f32.mrf.mxu1 }
 0x1ed   : > { %v1897_v6 = vpop.f32.mrf.mxu0 }
 0x1ee   : > { %v1898_v16 = vadd.f32 %v1897_v6, %v1855_v10 }
 0x1ef   : > { %v1899_v12 = vpop.f32.mrf.mxu0 }
 0x1f0   : > { %v1900_v14 = vadd.f32 %v1899_v12, %v1857_v7  ;;  %v1941_v25 = vadd.f32 %v1940_v63, %v1898_v16  ;;  %v6053_v16 = vld [vmem:[#allocation10 + $0xe4] ss:$16 sps:$4 sm:$0xff]  }
 0x1f1   : > { %v1901_v17 = vpop.f32.mrf.mxu0  ;;  %2709 = vmatprep.subr.bf16.mxu0 %v6053_v16  ;;  %v2483_v16 = vld [vmem:[%s7092_s14 + $0x8] sm:$0xff] }
 0x1f2   : > { %v1902_v19 = vadd.f32 %v1901_v17, %v1859_v13  ;;  %v1943_v21 = vadd.f32 %v1942_v5, %v1900_v14  ;;  %v2121_v29 = vmax.f32 %v1941_v25, 0.0  ;;  %v6054_v17 = vld [vmem:[#allocation10 + $0xe8] ss:$16 sps:$4 sm:$0xff]   ;;  %v6065_v25 = vld [vmem:[#allocation10 + $0xa4] ss:$16 sps:$4 sm:$0xff]  }
 0x1f3   : > { %v1903_v20 = vpop.f32.mrf.mxu0 }
 0x1f4   : > { %v1945_v22 = vadd.f32 %v1944_v15, %v1902_v19  ;;  %v1904_v23 = vadd.f32 %v1903_v20, %v1861_v18  ;;  %v2122_v28 = vmax.f32 %v1943_v21, 0.0  ;;  %v6051_v15 = vld [vmem:[#allocation10 + $0xe0] ss:$16 sps:$4 sm:$0xff]   ;;  %v6056_v18 = vld [vmem:[#allocation10 + $0xec] ss:$16 sps:$4 sm:$0xff]  }
 0x1f5   : > { %2752 = vmatprep.subr.bf16.mxu1 %v6056_v18  ;;  %v6059_v21 = vld [vmem:[#allocation10 + $0xc4] ss:$16 sps:$4 sm:$0xff]  }
 0x1f6   : > { %v1947_v26 = vadd.f32 %v1946_v24, %v1904_v23  ;;  %v2125_v27 = vmax.f32 %v1945_v22, 0.0  ;;  %v1983_v31 = vpop.f32.mrf.mxu1  ;;  %v6062_v22 = vld [vmem:[#allocation10 + $0xcc] ss:$16 sps:$4 sm:$0xff]   ;;  %v6057_v23 = vld [vmem:[#allocation10 + $0xc0] ss:$16 sps:$4 sm:$0xff]  }
 0x1f7   : > { %v1984_v43 = vadd.f32 %v1983_v31, %v749_v38  ;;  %v6060_v24 = vld [vmem:[#allocation10 + $0xc8] ss:$16 sps:$4 sm:$0xff]   ;;  %v6071_v31 = vld [vmem:[#allocation10 + $0x84] ss:$16 sps:$4 sm:$0xff]  }
 0x1f8   : > { %v2126_v51 = vmax.f32 %v1947_v26, 0.0  ;;  %v2129_v9 = vpack.c.bf16 %v2125_v27, %v2121_v29  ;;  %v1985_v32 = vpop.f32.mrf.mxu1  ;;  %v6068_v26 = vld [vmem:[#allocation10 + $0xac] ss:$16 sps:$4 sm:$0xff]   ;;  %v6063_v27 = vld [vmem:[#allocation10 + $0xa0] ss:$16 sps:$4 sm:$0xff]  }
 0x1f9   : > { %v1986_v42 = vadd.f32 %v1985_v32, %v753_v33  ;;  %v5171_v29 = vld [vmem:[%s7324_s5] ss:$0 sm:$0xff]  ;;  %v6074_v32 = vld [vmem:[#allocation10 + $0x8c] ss:$16 sps:$4 sm:$0xff]  }
 0x1fa   : > { %v2130_v30 = vpack.c.bf16 %v2126_v51, %v2122_v28  ;;  %v1987_v36 = vpop.f32.mrf.mxu1  ;;  %v6066_v28 = vld [vmem:[#allocation10 + $0xa8] ss:$16 sps:$4 sm:$0xff]  }
 0x1fb   : > { %v1988_v46 = vadd.f32 %v1987_v36, %v749_v38  ;;  %v6072_v36 = vld [vmem:[#allocation10 + $0x88] ss:$16 sps:$4 sm:$0xff]  }
 0x1fc   : > { %2428 = vmatprep.mubr.bf16.mxu0 %v2130_v30  ;;  %v1989_v40 = vpop.f32.mrf.mxu1 }
 0x1fd   : > { %2429 = vmatmul.mubr.bf16.vlgmr.msra.gmra.mxu0 %v2129_v9  ;;  %v1990_v53 = vadd.f32 %v1989_v40, %v753_v33  ;;  %v6077_v33 = vld [vmem:[#allocation10 + $0x64] ss:$16 sps:$4 sm:$0xff]  }
 0x1fe   : > { %2741 = vmatprep.mubr.bf16.mxu0 %v6794_v11  ;;  %2710 = vmatpush1.bf16.msra.mxu0 %v6051_v15 }
 0x1ff   : > { %2711 = vmatprep.subr.bf16.mxu0 %v6059_v21  ;;  %v6099_v21 = vld [vmem:[#allocation13 + $0x188] ss:$28 sps:$4 sm:$0xff]  }
 0x202   : > { %2712 = vmatpush1.bf16.msra.mxu0 %v6057_v23 }
 0x203   : > { %2713 = vmatprep.subr.bf16.mxu0 %v6065_v25  ;;  %v6105_v25 = vld [vmem:[#allocation13 + $0x150] ss:$28 sps:$4 sm:$0xff]  }
 0x206   : > { %2714 = vmatpush1.bf16.msra.mxu0 %v6063_v27  ;;  %v6113_v27 = vld [vmem:[#allocation13 + $0x11c] ss:$28 sps:$4 sm:$0xff]  }
 0x207   : > { %2715 = vmatprep.subr.bf16.mxu0 %v6071_v31  ;;  %v6117_v31 = vld [vmem:[#allocation13 + $0xe0] ss:$28 sps:$4 sm:$0xff]  }
 0x22d   : > { %v2026_v35 = vpop.f32.mrf.mxu0 }
 0x22e   : > { %v2027_v48 = vadd.f32 %v2026_v35, %v1984_v43  ;;  %v6069_v35 = vld [vmem:[#allocation10 + $0x80] ss:$16 sps:$4 sm:$0xff]  }
 0x22f   : > { %v2028_v37 = vpop.f32.mrf.mxu0  ;;  %2716 = vmatpush1.bf16.msra.mxu0 %v6069_v35  ;;  %v6125_v35 = vld [vmem:[#allocation13 + $0xac] ss:$28 sps:$4 sm:$0xff]  }
 0x230   : > { %v2029_v47 = vadd.f32 %v2028_v37, %v1986_v42  ;;  %v6080_v42 = vld [vmem:[#allocation10 + $0x6c] ss:$16 sps:$4 sm:$0xff]   ;;  %2717 = vmatprep.subr.bf16.mxu0 %v6077_v33 }
 0x231   : > { %v2030_v39 = vpop.f32.mrf.mxu0  ;;  %v6126_v33 = vld [vmem:[#allocation13 + $0x428] ss:$28 sps:$4 sm:$0xff]  }
 0x232   : > { %v2031_v54 = vadd.f32 %v2030_v39, %v1988_v46 }
 0x233   : > { %v2032_v41 = vpop.f32.mrf.mxu0 }
 0x234   : > { %v2033_v62 = vadd.f32 %v2032_v41, %v1990_v53  ;;  %v6075_v41 = vld [vmem:[#allocation10 + $0x60] ss:$16 sps:$4 sm:$0xff]  }
 0x235   : > { %v2112_v45 = vpop.f32.mrf.mxu0  ;;  %2718 = vmatpush1.bf16.msra.mxu0 %v6075_v41  ;;  %v6081_v53 = vld [vmem:[#allocation10 + $0x40] ss:$16 sps:$4 sm:$0xff]  }
 0x236   : > { %v2069_v44 = vpop.f32.mrf.mxu1  ;;  %v6132_v41 = vld [vmem:[#allocation13 + $0x3f0] ss:$28 sps:$4 sm:$0xff]  }
 0x237   : > { %v2114_v50 = vpop.f32.mrf.mxu0  ;;  %v2070_v59 = vadd.f32 %v2069_v44, %v2027_v48  ;;  %v6078_v44 = vld [vmem:[#allocation10 + $0x68] ss:$16 sps:$4 sm:$0xff]  }
 0x238   : > { %v2071_v49 = vpop.f32.mrf.mxu1 }
 0x239   : > { %v2072_v57 = vadd.f32 %v2071_v49, %v2029_v47  ;;  %v2116_v61 = vpop.f32.mrf.mxu0  ;;  %v2113_v5 = vadd.f32 %v2112_v45, %v2070_v59  ;;  %v6083_v45 = vld [vmem:[#allocation10 + $0x44] ss:$16 sps:$4 sm:$0xff]   ;;  %v6086_v47 = vld [vmem:[#allocation10 + $0x4c] ss:$16 sps:$4 sm:$0xff]  }
 0x23a   : > { %v2073_v60 = vpop.f32.mrf.mxu1  ;;  %2719 = vmatprep.subr.bf16.mxu0 %v6083_v45  ;;  %v6138_v45 = vld [vmem:[#allocation13 + $0x3b8] ss:$28 sps:$4 sm:$0xff]  }
 0x23b   : > { %v2074_v58 = vadd.f32 %v2073_v60, %v2031_v54  ;;  %v2118_v0 = vpop.f32.mrf.mxu0  ;;  %v2115_v1 = vadd.f32 %v2114_v50, %v2072_v57  ;;  %v2123_v12 = vmax.f32 %v2113_v5, 0.0  ;;  %v6084_v54 = vld [vmem:[#allocation10 + $0x48] ss:$16 sps:$4 sm:$0xff]   ;;  %v6089_v57 = vld [vmem:[#allocation10 + $0x24] ss:$16 sps:$4 sm:$0xff]   ;;  %2720 = vmatpush1.bf16.msra.mxu0 %v6081_v53 }
 0x23c   : > { %v2075_v63 = vpop.f32.mrf.mxu1  ;;  %v6092_v60 = vld [vmem:[#allocation10 + $0x2c] ss:$16 sps:$4 sm:$0xff]   ;;  %2721 = vmatprep.subr.bf16.mxu0 %v6089_v57 }
 0x23d   : > { %v2117_v2 = vadd.f32 %v2116_v61, %v2074_v58  ;;  %v2076_v3 = vadd.f32 %v2075_v63, %v2033_v62  ;;  %v2124_v8 = vmax.f32 %v2115_v1, 0.0  ;;  %v6087_v61 = vld [vmem:[#allocation10 + $0x20] ss:$16 sps:$4 sm:$0xff]   ;;  %v6090_v62 = vld [vmem:[#allocation10 + $0x28] ss:$16 sps:$4 sm:$0xff]  }
 0x23e   : > { %v6095_v58 = vld [vmem:[#allocation10 + $0x4] ss:$16 sps:$4 sm:$0xff]   ;;  %v6098_v63 = vld [vmem:[#allocation10 + $0xc] ss:$16 sps:$4 sm:$0xff]   ;;  %v6096_v1 = vld [vmem:[#allocation10 + $0x8] ss:$16 sps:$4 sm:$0xff]  }
 0x23f   : > { %v2119_v6 = vadd.f32 %v2118_v0, %v2076_v3  ;;  %v2127_v7 = vmax.f32 %v2117_v2, 0.0  ;;  %2722 = vmatpush1.bf16.msra.mxu0 %v6087_v61  ;;  %v6093_v0 = vld [vmem:[#allocation10] ss:$16 sps:$4 sm:$0xff]   ;;  %v6150_v57 = vld [vmem:[#allocation13 + $0x6c8] ss:$28 sps:$4 sm:$0xff]  }
 0x240   : > { %2723 = vmatprep.subr.bf16.mxu0 %v6095_v58  ;;  %v6101_v2 = vld [vmem:[#allocation13 + $0x18c] ss:$28 sps:$4 sm:$0xff]   ;;  %v6161_v58 = vld [vmem:[#allocation13 + $0x2dc] ss:$28 sps:$4 sm:$0xff]  }
 0x241   : > { %v2128_v10 = vmax.f32 %v2119_v6, 0.0  ;;  %v2131_v14 = vpack.c.bf16 %v2127_v7, %v2123_v12  ;;  %v6104_v3 = vld [vmem:[#allocation13 + $0x50c] ss:$28 sps:$4 sm:$0xff]  }
 0x242   : > { %v6152_v53 = vld [vmem:[#allocation13 + $0x6cc] ss:$28 sps:$4 sm:$0xff]  }
 0x243   : > { %v2132_v13 = vpack.c.bf16 %v2128_v10, %v2124_v8  ;;  %2724 = vmatpush1.bf16.msra.mxu0 %v6093_v0  ;;  %v6153_v61 = vld [vmem:[#allocation13 + $0x310] ss:$28 sps:$4 sm:$0xff]   ;;  %v6159_v0 = vld [vmem:[#allocation13 + $0x2d8] ss:$28 sps:$4 sm:$0xff]  }
 0x244   : > { %4252 = vmatprep.subr.bf16.mxu0 %v6101_v2  ;;  %v6167_v2 = vld [vmem:[#allocation13 + $0x2a4] ss:$28 sps:$4 sm:$0xff]  }
 0x245   : > { %2469 = vmatprep.mubr.bf16.mxu1 %v2132_v13  ;;  %v2482_v13 = vld [vmem:[%s7092_s14] sm:$0xff]  ;;  %s6796_s14 = smov [#allocation15]  }
 0x246   : > { %2470 = vmatmul.mubr.bf16.vlgmr.msra.gmra.mxu1 %v2131_v14  ;;  %s6671_s28 = sshll.u32 %s6796_s14, 4  ;;  %s6672_s28 = int_to_ptr.vmem [resolvable:$false] %s6671_s28 }
 0x247   : > { %2784 = vmatprep.mubr.bf16.mxu1 %v6794_v11  ;;  %2753 = vmatpush1.bf16.msra.mxu1 %v6054_v17  ;;  %s6673_s22 = scalar_lea.vmem %s6672_s28, 1024  ;;  %p6674_p1 = scmp.lt.s32.totalorder %s7226_s2, %s6672_s28 }
 0x248   : > { %2754 = vmatprep.subr.bf16.mxu1 %v6062_v22  ;;  %v6102_v22 = vld [vmem:[#allocation13 + $0x508] ss:$28 sps:$4 sm:$0xff]   ;;  %p6675_p4 = scmp.lt.s32.totalorder %s6673_s22, %s6667_s24 }
 0x24a   : > { %p6676_p6 = por %p6675_p4, %p6674_p1 }
 0x24b   : > { %2755 = vmatpush1.bf16.msra.mxu1 %v6060_v24  ;;  %v6107_v24 = vld [vmem:[#allocation13 + $0x154] ss:$28 sps:$4 sm:$0xff]  }
 0x24c   : > { %2756 = vmatprep.subr.bf16.mxu1 %v6068_v26  ;;  %v6108_v26 = vld [vmem:[#allocation13 + $0x4d0] ss:$28 sps:$4 sm:$0xff]   ;;  %p6677_p8 = pnand %p6676_p6, %p6670_p11 }
 0x24f   : > { %2757 = vmatpush1.bf16.msra.mxu1 %v6066_v28  ;;  %v6116_v28 = vld [vmem:[#allocation13 + $0x49c] ss:$28 sps:$4 sm:$0xff]  }
 0x250   : > { %2758 = vmatprep.subr.bf16.mxu1 %v6074_v32  ;;  %v6120_v32 = vld [vmem:[#allocation13 + $0x460] ss:$28 sps:$4 sm:$0xff]  }
 0x253   : > { %2759 = vmatpush1.bf16.msra.mxu1 %v6072_v36  ;;  %v6128_v36 = vld [vmem:[#allocation13 + $0x42c] ss:$28 sps:$4 sm:$0xff]  }
 0x254   : > { %2760 = vmatprep.subr.bf16.mxu1 %v6080_v42  ;;  %v6137_v42 = vld [vmem:[#allocation13 + $0x3c] ss:$28 sps:$4 sm:$0xff]  }
 0x257   : > { %2761 = vmatpush1.bf16.msra.mxu1 %v6078_v44  ;;  %v6135_v44 = vld [vmem:[#allocation13 + $0x38] ss:$28 sps:$4 sm:$0xff]  }
 0x258   : > { %2762 = vmatprep.subr.bf16.mxu1 %v6086_v47  ;;  %v6146_v47 = vld [vmem:[#allocation13 + $0x384] ss:$28 sps:$4 sm:$0xff]  }
 0x25b   : > { %2763 = vmatpush1.bf16.msra.mxu1 %v6084_v54  ;;  %v6147_v54 = vld [vmem:[#allocation13 + $0x348] ss:$28 sps:$4 sm:$0xff]  }
 0x25c   : > { %2764 = vmatprep.subr.bf16.mxu1 %v6092_v60  ;;  %v6158_v60 = vld [vmem:[#allocation13 + $0x694] ss:$28 sps:$4 sm:$0xff]  }
 0x25f   : > { %2765 = vmatpush1.bf16.msra.mxu1 %v6090_v62  ;;  %v6156_v62 = vld [vmem:[#allocation13 + $0x690] ss:$28 sps:$4 sm:$0xff]  }
 0x260   : > { %2766 = vmatprep.subr.bf16.mxu1 %v6098_v63  ;;  %v6164_v63 = vld [vmem:[#allocation13 + $0x65c] ss:$28 sps:$4 sm:$0xff]  }
 0x263   : > { %2767 = vmatpush1.bf16.msra.mxu1 %v6096_v1  ;;  %v6162_v1 = vld [vmem:[#allocation13 + $0x658] ss:$28 sps:$4 sm:$0xff]  }
 0x264   : > { %4295 = vmatprep.subr.bf16.mxu1 %v6104_v3  ;;  %v6170_v3 = vld [vmem:[#allocation13 + $0x624] ss:$28 sps:$4 sm:$0xff]  }
 0x2bd   : > { %v5518_v19 = vpop.f32.mrf.mxu0 }
 0x2bf   : > { %v5519_v20 = vpop.f32.mrf.mxu0 }
 0x2c0   : > { %v5520_v51 = vadd.f32 %v5519_v20, %v5518_v19 }
 0x2c1   : > { %v5521_v11 = vpop.f32.mrf.mxu0 }
 0x2c2   : > { %v2431_v38 = vadd.f32 %v5520_v51, %v5171_v29  ;;  %v6111_v51 = vld [vmem:[#allocation13 + $0x118] ss:$28 sps:$4 sm:$0xff]  }
 0x2c3   : > { %v5522_v30 = vpop.f32.mrf.mxu0 }
 0x2c4   : > { %v5523_v39 = vadd.f32 %v5522_v30, %v5521_v11  ;;  %v6110_v11 = vld [vmem:[#allocation13 + $0x4d4] ss:$28 sps:$4 sm:$0xff]   ;;  %v6119_v30 = vld [vmem:[#allocation13 + $0xe4] ss:$28 sps:$4 sm:$0xff]  }
 0x2c6   : > { %v2434_v49 = vadd.f32 %v5523_v39, %v5171_v29  ;;  %v6114_v29 = vld [vmem:[#allocation13 + $0x498] ss:$28 sps:$4 sm:$0xff]  }
 0x2c7   : > { %v6134_v39 = vld [vmem:[#allocation13 + $0x3f4] ss:$28 sps:$4 sm:$0xff]  }
 0x306   : > { %v5540_v9 = vpop.f32.mrf.mxu1 }
 0x308   : > { %v5541_v37 = vpop.f32.mrf.mxu1 }
 0x309   : > { %v5542_v40 = vadd.f32 %v5541_v37, %v5540_v9  ;;  %v6122_v9 = vld [vmem:[#allocation13 + $0x464] ss:$28 sps:$4 sm:$0xff]  }
 0x30a   : > { %v5543_v43 = vpop.f32.mrf.mxu1  ;;  %v6123_v37 = vld [vmem:[#allocation13 + $0xa8] ss:$28 sps:$4 sm:$0xff]  }
 0x30b   : > { %v2472_v46 = vadd.f32 %v5542_v40, %v2431_v38  ;;  %v6131_v38 = vld [vmem:[#allocation13 + $0x74] ss:$28 sps:$4 sm:$0xff]  }
 0x30c   : > { %v5544_v48 = vpop.f32.mrf.mxu1  ;;  %v6129_v40 = vld [vmem:[#allocation13 + $0x70] ss:$28 sps:$4 sm:$0xff]  }
 0x30d   : > { %4728 = vst [vmem:[%s7170_s27] sm:$0xff] %v2472_v46  ;;  %v5545_v50 = vadd.f32 %v5544_v48, %v5543_v43  ;;  %2478 = vrot.lane.b32.xlu0 %v2472_v46, %s6795_s8  ;;  %v6140_v43 = vld [vmem:[#allocation13 + $0x3bc] ss:$28 sps:$4 sm:$0xff]  }
 0x30e   : > { %v6141_v48 = vld [vmem:[#allocation13] ss:$28 sps:$4 sm:$0xff]  }
 0x30f   : > { %v2475_v59 = vadd.f32 %v5545_v50, %v2434_v49  ;;  %v6144_v49 = vld [vmem:[#allocation13 + $0x380] ss:$28 sps:$4 sm:$0xff]   ;;  %v6149_v50 = vld [vmem:[#allocation13 + $0x34c] ss:$28 sps:$4 sm:$0xff]  }
 0x311   : > { %4729 = vst [vmem:[%s7170_s27 + $0x10] sm:$0xff] %v2475_v59  ;;  %2480 = vrot.lane.b32.xlu0 %v2475_v59, %s6795_s8 }
 0x37f   : > { %v2479_v5 = vpop.permute.xlu0 %2478 }
 0x380   : > { %v2484_v6 = vmul.f32 0.5, %v2479_v5  ;;  %v6165_v5 = vld [vmem:[#allocation13 + $0x2a0] ss:$28 sps:$4 sm:$0xff]  }
 0x382   : > { %v2486_v7 = vmul.f32 1.442695, %v2484_v6  ;;  %v6168_v6 = vld [vmem:[#allocation13 + $0x620] ss:$28 sps:$4 sm:$0xff]  }
 0x383   : > { %v2481_v8 = vpop.permute.xlu0 %2480 }
 0x384   : > { %6419 = vpow2.f32 %v2486_v7  ;;  %v2485_v10 = vmul.f32 0.5, %v2481_v8  ;;  %v6173_v7 = vld [vmem:[#allocation13 + $0x26c] ss:$28 sps:$4 sm:$0xff]  }
 0x385   : > { %v6176_v8 = vld [vmem:[#allocation13 + $0x5ec] ss:$28 sps:$4 sm:$0xff]  }
 0x386   : > { %v2488_v12 = vmul.f32 1.442695, %v2485_v10  ;;  %v6171_v10 = vld [vmem:[#allocation13 + $0x268] ss:$28 sps:$4 sm:$0xff]  }
 0x388   : > { %6421 = vpow2.f32 %v2488_v12  ;;  %v6174_v12 = vld [vmem:[#allocation13 + $0x5e8] ss:$28 sps:$4 sm:$0xff]  }
 0x391   : > { %v6420_v14 = vpop.eup %6419 }
 0x392   : > { %v2490_v15 = vmul.f32 %v6420_v14, %v2482_v13  ;;  %v6179_v13 = vld [vmem:[#allocation13 + $0x234] ss:$28 sps:$4 sm:$0xff]  }
 0x393   : > { %v6182_v14 = vld [vmem:[#allocation13 + $0x5b4] ss:$28 sps:$4 sm:$0xff]  }
 0x394   : > { %v2492_v17 = vadd.f32 %v2490_v15, %v2472_v46  ;;  %v6143_v46 = vld [vmem:[#allocation13 + $0x4] ss:$28 sps:$4 sm:$0xff]   ;;  %v6177_v15 = vld [vmem:[#allocation13 + $0x230] ss:$28 sps:$4 sm:$0xff]  }
 0x395   : > { %v6422_v18 = vpop.eup %6421 }
 0x396   : > { %v2491_v19 = vmul.f32 %v6422_v18, %v2483_v16  ;;  %4730 = vst [vmem:[%s7170_s27 + $0x8] sm:$0xff] %v2492_v17  ;;  %v6180_v16 = vld [vmem:[#allocation13 + $0x5b0] ss:$28 sps:$4 sm:$0xff]   ;;  %v6188_v18 = vld [vmem:[#allocation13 + $0x57c] ss:$28 sps:$4 sm:$0xff]  }
 0x398   : > { %v2493_v20 = vadd.f32 %v2491_v19, %v2475_v59  ;;  %v6155_v59 = vld [vmem:[#allocation13 + $0x314] ss:$28 sps:$4 sm:$0xff]  }
 0x399   : > { %v6183_v19 = vld [vmem:[#allocation13 + $0x1f8] ss:$28 sps:$4 sm:$0xff]  }
 0x39a   : > { %v2494_v23 = vpack.c.bf16 %v2493_v20, %v2492_v17  ;;  %4731 = vst [vmem:[%s7170_s27 + $0x18] sm:$0xff] %v2493_v20  ;;  %v6185_v17 = vld [vmem:[#allocation13 + $0x1fc] ss:$28 sps:$4 sm:$0xff]  }
 0x39b   : > { %v6186_v20 = vld [vmem:[#allocation13 + $0x578] ss:$28 sps:$4 sm:$0xff]  }
 0x39c   : > { %2742 = vmatmul.mubr.bf16.vlgmr.msra.gmra.mxu0 %v2494_v23  ;;  %2785 = vmatmul.mubr.bf16.vlgmr.msra.gmra.mxu1 %v2494_v23  ;;  %v6189_v23 = vld [vmem:[#allocation13 + $0x1c0] ss:$28 sps:$4 sm:$0xff]  }
 0x39d   : > { %4253 = vmatpush1.bf16.msra.mxu0 %v6099_v21  ;;  %4296 = vmatpush1.bf16.msra.mxu1 %v6102_v22  ;;  %v6191_v21 = vld [vmem:[#allocation13 + $0x1c4] ss:$28 sps:$4 sm:$0xff]  }
 0x39e   : > { %4254 = vmatprep.subr.bf16.mxu0 %v6107_v24  ;;  %4297 = vmatprep.subr.bf16.mxu1 %v6110_v11  ;;  %v6194_v22 = vld [vmem:[#allocation13 + $0x544] ss:$28 sps:$4 sm:$0xff]   ;;  %v6197_v11 = vld [vmem:[#allocation13 + $0x194] ss:$28 sps:$4 sm:$0xff]  }
 0x39f   : > { %v6192_v24 = vld [vmem:[#allocation13 + $0x540] ss:$28 sps:$4 sm:$0xff]  }
 0x3a1   : > { %4255 = vmatpush1.bf16.msra.mxu0 %v6105_v25  ;;  %4298 = vmatpush1.bf16.msra.mxu1 %v6108_v26  ;;  %v6200_v25 = vld [vmem:[#allocation13 + $0x514] ss:$28 sps:$4 sm:$0xff]   ;;  %v2527_v26 = vld [vmem:[#allocation11] sm:$0xf] }
 0x3a2   : > { %4256 = vmatprep.subr.bf16.mxu0 %v6113_v27  ;;  %4299 = vmatprep.subr.bf16.mxu1 %v6116_v28 }
 0x3a5   : > { %4257 = vmatpush1.bf16.msra.mxu0 %v6111_v51  ;;  %4300 = vmatpush1.bf16.msra.mxu1 %v6114_v29  ;;  %v2536_v51 = vrot.slane %v2527_v26, %v7146_v55  ;;  %v2544_v29 = vrot.slane %v2527_v26, %v7158_v4 }
 0x3a6   : > { %4258 = vmatprep.subr.bf16.mxu0 %v6119_v30  ;;  %4301 = vmatprep.subr.bf16.mxu1 %v6122_v9  ;;  %v2532_v30 = vrot.slane %v2527_v26, %v7149_v56  ;;  %v2540_v9 = vrot.slane %v2527_v26, %v7161_v34  ;;  %v6239_v26 = vld [vmem:[#allocation13 + $0xc] ss:$28 sps:$4 sm:$0xff]  }
 0x3a9   : > { %4259 = vmatpush1.bf16.msra.mxu0 %v6117_v31  ;;  %4302 = vmatpush1.bf16.msra.mxu1 %v6120_v32 }
 0x3aa   : > { %4260 = vmatprep.subr.bf16.mxu0 %v6125_v35  ;;  %4303 = vmatprep.subr.bf16.mxu1 %v6128_v36 }
 0x3ad   : > { %4261 = vmatpush1.bf16.msra.mxu0 %v6123_v37  ;;  %4304 = vmatpush1.bf16.msra.mxu1 %v6126_v33 }
 0x3ae   : > { %4262 = vmatprep.subr.bf16.mxu0 %v6131_v38  ;;  %4305 = vmatprep.subr.bf16.mxu1 %v6134_v39 }
 0x3b1   : > { %4263 = vmatpush1.bf16.msra.mxu0 %v6129_v40  ;;  %4306 = vmatpush1.bf16.msra.mxu1 %v6132_v41 }
 0x3b2   : > { %4264 = vmatprep.subr.bf16.mxu0 %v6137_v42  ;;  %4307 = vmatprep.subr.bf16.mxu1 %v6140_v43 }
 0x3b5   : > { %4265 = vmatpush1.bf16.msra.mxu0 %v6135_v44  ;;  %4308 = vmatpush1.bf16.msra.mxu1 %v6138_v45 }
 0x3b6   : > { %4266 = vmatprep.subr.bf16.mxu0 %v6143_v46  ;;  %4309 = vmatprep.subr.bf16.mxu1 %v6146_v47 }
 0x3b9   : > { %4267 = vmatpush1.bf16.msra.mxu0 %v6141_v48  ;;  %4310 = vmatpush1.bf16.msra.mxu1 %v6144_v49 }
 0x3ba   : > { %4268 = vmatprep.subr.bf16.mxu0 %v6149_v50  ;;  %4311 = vmatprep.subr.bf16.mxu1 %v6152_v53 }
 0x3bd   : > { %4269 = vmatpush2.bf16.msra.mxu0 %v6147_v54  ;;  %4312 = vmatpush2.bf16.msra.mxu1 %v6150_v57 }
 0x3be   : > { %4270 = vmatprep.subr.bf16.mxu0 %v6155_v59  ;;  %4313 = vmatprep.subr.bf16.mxu1 %v6158_v60 }
 0x3c1   : > { %4271 = vmatpush2.bf16.msra.mxu0 %v6153_v61  ;;  %4314 = vmatpush2.bf16.msra.mxu1 %v6156_v62  ;;  %v6195_v61 = vld [vmem:[#allocation13 + $0x190] ss:$28 sps:$4 sm:$0xff]  }
 0x3c2   : > { %4272 = vmatprep.subr.bf16.mxu0 %v6161_v58  ;;  %4315 = vmatprep.subr.bf16.mxu1 %v6164_v63  ;;  %v6198_v62 = vld [vmem:[#allocation13 + $0x510] ss:$28 sps:$4 sm:$0xff]  }
 0x3c5   : > { %4273 = vmatpush2.bf16.msra.mxu0 %v6159_v0  ;;  %4316 = vmatpush2.bf16.msra.mxu1 %v6162_v1  ;;  %v6203_v0 = vld [vmem:[#allocation13 + $0x15c] ss:$28 sps:$4 sm:$0xff]  }
 0x3c6   : > { %4274 = vmatprep.subr.bf16.mxu0 %v6167_v2  ;;  %4317 = vmatprep.subr.bf16.mxu1 %v6170_v3  ;;  %v6206_v1 = vld [vmem:[#allocation13 + $0x4dc] ss:$28 sps:$4 sm:$0xff]  }
 0x3c7   : > { %v6201_v2 = vld [vmem:[#allocation13 + $0x158] ss:$28 sps:$4 sm:$0xff]  }
 0x3c8   : > { %v6204_v3 = vld [vmem:[#allocation13 + $0x4d8] ss:$28 sps:$4 sm:$0xff]  }
 0x3c9   : > { %4275 = vmatpush2.bf16.msra.mxu0 %v6165_v5  ;;  %4318 = vmatpush2.bf16.msra.mxu1 %v6168_v6  ;;  %v6209_v5 = vld [vmem:[#allocation13 + $0x124] ss:$28 sps:$4 sm:$0xff]  }
 0x3ca   : > { %4276 = vmatprep.subr.bf16.mxu0 %v6173_v7  ;;  %4319 = vmatprep.subr.bf16.mxu1 %v6176_v8  ;;  %v6212_v6 = vld [vmem:[#allocation13 + $0x4a4] ss:$28 sps:$4 sm:$0xff]  }
 0x3cb   : > { %v6207_v7 = vld [vmem:[#allocation13 + $0x120] ss:$28 sps:$4 sm:$0xff]  }
 0x3cc   : > { %v6210_v8 = vld [vmem:[#allocation13 + $0x4a0] ss:$28 sps:$4 sm:$0xff]  }
 0x3cd   : > { %4277 = vmatpush2.bf16.msra.mxu0 %v6171_v10  ;;  %4320 = vmatpush2.bf16.msra.mxu1 %v6174_v12  ;;  %v6215_v10 = vld [vmem:[#allocation13 + $0xec] ss:$28 sps:$4 sm:$0xff]  }
 0x3ce   : > { %4278 = vmatprep.subr.bf16.mxu0 %v6179_v13  ;;  %4321 = vmatprep.subr.bf16.mxu1 %v6182_v14  ;;  %v6218_v12 = vld [vmem:[#allocation13 + $0x46c] ss:$28 sps:$4 sm:$0xff]  }
 0x3cf   : > { %v6213_v13 = vld [vmem:[#allocation13 + $0xe8] ss:$28 sps:$4 sm:$0xff]  }
 0x3d0   : > { %v6216_v14 = vld [vmem:[#allocation13 + $0x468] ss:$28 sps:$4 sm:$0xff]  }
 0x3d1   : > { %4279 = vmatpush2.bf16.msra.mxu0 %v6177_v15  ;;  %4322 = vmatpush2.bf16.msra.mxu1 %v6180_v16  ;;  %v6221_v15 = vld [vmem:[#allocation13 + $0xb4] ss:$28 sps:$4 sm:$0xff]  }
 0x3d2   : > { %4280 = vmatprep.subr.bf16.mxu0 %v6185_v17  ;;  %4323 = vmatprep.subr.bf16.mxu1 %v6188_v18  ;;  %v6224_v16 = vld [vmem:[#allocation13 + $0x434] ss:$28 sps:$4 sm:$0xff]  }
 0x3d3   : > { %v6219_v17 = vld [vmem:[#allocation13 + $0xb0] ss:$28 sps:$4 sm:$0xff]  }
 0x3d4   : > { %v6222_v18 = vld [vmem:[#allocation13 + $0x430] ss:$28 sps:$4 sm:$0xff]  }
 0x3d5   : > { %4281 = vmatpush2.bf16.msra.mxu0 %v6183_v19  ;;  %4324 = vmatpush2.bf16.msra.mxu1 %v6186_v20  ;;  %v6227_v19 = vld [vmem:[#allocation13 + $0x7c] ss:$28 sps:$4 sm:$0xff]  }
 0x3d6   : > { %4282 = vmatprep.subr.bf16.mxu0 %v6191_v21  ;;  %4325 = vmatprep.subr.bf16.mxu1 %v6194_v22  ;;  %v6230_v20 = vld [vmem:[#allocation13 + $0x3fc] ss:$28 sps:$4 sm:$0xff]  }
 0x3d7   : > { %v6225_v21 = vld [vmem:[#allocation13 + $0x78] ss:$28 sps:$4 sm:$0xff]  }
 0x3d8   : > { %v6228_v22 = vld [vmem:[#allocation13 + $0x3f8] ss:$28 sps:$4 sm:$0xff]  }
 0x3d9   : > { %4283 = vmatpush2.bf16.msra.mxu0 %v6189_v23  ;;  %4326 = vmatpush2.bf16.msra.mxu1 %v6192_v24  ;;  %v6233_v23 = vld [vmem:[#allocation13 + $0x44] ss:$28 sps:$4 sm:$0xff]  }
 0x3da   : > { %4338 = vmatprep.subr.bf16.mxu0 %v6197_v11  ;;  %4381 = vmatprep.subr.bf16.mxu1 %v6200_v25  ;;  %v6236_v24 = vld [vmem:[#allocation13 + $0x3c4] ss:$28 sps:$4 sm:$0xff]  }
 0x3db   : > { %v6231_v11 = vld [vmem:[#allocation13 + $0x40] ss:$28 sps:$4 sm:$0xff]  }
 0x3dc   : > { %v6234_v25 = vld [vmem:[#allocation13 + $0x3c0] ss:$28 sps:$4 sm:$0xff]  }
 0x45c   : > { %v2743_v27 = vpop.f32.mrf.mxu0  ;;  %v2786_v28 = vpop.f32.mrf.mxu1 }
 0x45d   : > { %v2744_v40 = vadd.f32 %v2743_v27, %v2532_v30  ;;  %v2787_v41 = vadd.f32 %v2786_v28, %v2540_v9  ;;  %v6242_v27 = vld [vmem:[#allocation13 + $0x38c] ss:$28 sps:$4 sm:$0xff]  }
 0x45e   : > { %v2745_v31 = vpop.f32.mrf.mxu0  ;;  %v2788_v32 = vpop.f32.mrf.mxu1  ;;  %v6237_v28 = vld [vmem:[#allocation13 + $0x8] ss:$28 sps:$4 sm:$0xff]  }
 0x45f   : > { %v2746_v37 = vadd.f32 %v2745_v31, %v2536_v51  ;;  %v2789_v33 = vadd.f32 %v2788_v32, %v2544_v29  ;;  %v2795_v54 = vmax.f32 %v2744_v40, 0.0  ;;  %v2797_v57 = vmax.f32 %v2787_v41, 0.0  ;;  %v6246_v31 = vld [vmem:[#allocation13 + $0x6d0] ss:$28 sps:$4 sm:$0xff]   ;;  %v6251_v32 = vld [vmem:[#allocation13 + $0x31c] ss:$28 sps:$4 sm:$0xff]  }
 0x460   : > { %v2747_v35 = vpop.f32.mrf.mxu0  ;;  %v2790_v36 = vpop.f32.mrf.mxu1  ;;  %v6258_v40 = vld [vmem:[#allocation13 + $0x660] ss:$28 sps:$4 sm:$0xff]   ;;  %v6263_v41 = vld [vmem:[#allocation13 + $0x2ac] ss:$28 sps:$4 sm:$0xff]  }
 0x461   : > { %v2748_v38 = vadd.f32 %v2747_v35, %v2532_v30  ;;  %v2791_v39 = vadd.f32 %v2790_v36, %v2540_v9  ;;  %v2796_v48 = vmax.f32 %v2746_v37, 0.0  ;;  %v2798_v49 = vmax.f32 %v2789_v33, 0.0  ;;  %v6248_v30 = vld [vmem:[#allocation13 + $0x6d4] ss:$28 sps:$4 sm:$0xff]   ;;  %v6254_v35 = vld [vmem:[#allocation13 + $0x69c] ss:$28 sps:$4 sm:$0xff]  }
 0x462   : > { %v2749_v42 = vpop.f32.mrf.mxu0  ;;  %v2792_v43 = vpop.f32.mrf.mxu1  ;;  %v6243_v9 = vld [vmem:[#allocation13 + $0x350] ss:$28 sps:$4 sm:$0xff]   ;;  %v6249_v36 = vld [vmem:[#allocation13 + $0x318] ss:$28 sps:$4 sm:$0xff]   ;;  %v6257_v33 = vld [vmem:[#allocation13 + $0x2e4] ss:$28 sps:$4 sm:$0xff]  }
 0x463   : > { %v2750_v44 = vadd.f32 %v2749_v42, %v2536_v51  ;;  %v2793_v45 = vadd.f32 %v2792_v43, %v2544_v29  ;;  %v2799_v46 = vmax.f32 %v2748_v38, 0.0  ;;  %v2801_v47 = vmax.f32 %v2791_v39, 0.0  ;;  %v6240_v51 = vld [vmem:[#allocation13 + $0x388] ss:$28 sps:$4 sm:$0xff]   ;;  %v6245_v29 = vld [vmem:[#allocation13 + $0x354] ss:$28 sps:$4 sm:$0xff]  }
 0x464   : > { %v6252_v37 = vld [vmem:[#allocation13 + $0x698] ss:$28 sps:$4 sm:$0xff]   ;;  %v6260_v38 = vld [vmem:[#allocation13 + $0x664] ss:$28 sps:$4 sm:$0xff]   ;;  %v6266_v42 = vld [vmem:[#allocation13 + $0x62c] ss:$28 sps:$4 sm:$0xff]  }
 0x465   : > { %v2800_v50 = vmax.f32 %v2750_v44, 0.0  ;;  %v2802_v53 = vmax.f32 %v2793_v45, 0.0  ;;  %v7186_v58 = vpack.c.bf16 %v2799_v46, %v2795_v54  ;;  %v7188_v63 = vpack.c.bf16 %v2801_v47, %v2797_v57  ;;  %v6255_v39 = vld [vmem:[#allocation13 + $0x2e0] ss:$28 sps:$4 sm:$0xff]   ;;  %v6261_v43 = vld [vmem:[#allocation13 + $0x2a8] ss:$28 sps:$4 sm:$0xff]  }
 0x466   : > { %v6264_v44 = vld [vmem:[#allocation13 + $0x628] ss:$28 sps:$4 sm:$0xff]   ;;  %v6269_v45 = vld [vmem:[#allocation13 + $0x274] ss:$28 sps:$4 sm:$0xff]  }
 0x467   : > { %v7182_v59 = vpack.c.bf16 %v2800_v50, %v2796_v48  ;;  %v7184_v60 = vpack.c.bf16 %v2802_v53, %v2798_v49  ;;  %v6272_v46 = vld [vmem:[#allocation13 + $0x5f4] ss:$28 sps:$4 sm:$0xff]   ;;  %v6275_v49 = vld [vmem:[#allocation13 + $0x23c] ss:$28 sps:$4 sm:$0xff]   ;;  %v6281_v57 = vld [vmem:[#allocation13 + $0x204] ss:$28 sps:$4 sm:$0xff]  }
 0x468   : > { %v6267_v47 = vld [vmem:[#allocation13 + $0x270] ss:$28 sps:$4 sm:$0xff]   ;;  %v6278_v50 = vld [vmem:[#allocation13 + $0x5bc] ss:$28 sps:$4 sm:$0xff]  }
 0x469   : > { %4284 = vmatprep.mubr.bf16.mxu0 %v7182_v59  ;;  %4327 = vmatprep.mubr.bf16.mxu1 %v7184_v60  ;;  %v6270_v48 = vld [vmem:[#allocation13 + $0x5f0] ss:$28 sps:$4 sm:$0xff]   ;;  %v6273_v53 = vld [vmem:[#allocation13 + $0x238] ss:$28 sps:$4 sm:$0xff]  }
 0x46a   : > { %4285 = vmatmul.mubr.bf16.vlgmr.msra.gmra.mxu0 %v7186_v58  ;;  %4328 = vmatmul.mubr.bf16.vlgmr.msra.gmra.mxu1 %v7188_v63  ;;  %v6276_v54 = vld [vmem:[#allocation13 + $0x5b8] ss:$28 sps:$4 sm:$0xff]  }
 0x46b   : > { %4339 = vmatpush1.bf16.msra.mxu0 %v6195_v61  ;;  %4382 = vmatpush1.bf16.msra.mxu1 %v6198_v62  ;;  %v6284_v61 = vld [vmem:[#allocation13 + $0x584] ss:$28 sps:$4 sm:$0xff]  }
 0x46c   : > { %4370 = vmatprep.mubr.bf16.mxu0 %v7182_v59  ;;  %4413 = vmatprep.mubr.bf16.mxu1 %v7184_v60  ;;  %v6279_v62 = vld [vmem:[#allocation13 + $0x200] ss:$28 sps:$4 sm:$0xff]  }
 0x46d   : > { %4340 = vmatprep.subr.bf16.mxu0 %v6203_v0  ;;  %4383 = vmatprep.subr.bf16.mxu1 %v6206_v1  ;;  %v6282_v0 = vld [vmem:[#allocation13 + $0x580] ss:$28 sps:$4 sm:$0xff]   ;;  %v6287_v1 = vld [vmem:[#allocation13 + $0x1cc] ss:$28 sps:$4 sm:$0xff]  }
 0x46f   : > { %4341 = vmatpush1.bf16.msra.mxu0 %v6201_v2  ;;  %4384 = vmatpush1.bf16.msra.mxu1 %v6204_v3  ;;  %v6290_v2 = vld [vmem:[#allocation13 + $0x54c] ss:$28 sps:$4 sm:$0xff]  }
 0x470   : > { %4342 = vmatprep.subr.bf16.mxu0 %v6209_v5  ;;  %4385 = vmatprep.subr.bf16.mxu1 %v6212_v6  ;;  %v6285_v3 = vld [vmem:[#allocation13 + $0x1c8] ss:$28 sps:$4 sm:$0xff]   ;;  %v6293_v6 = vld [vmem:[#allocation13 + $0x19c] ss:$28 sps:$4 sm:$0xff]  }
 0x471   : > { %v6288_v5 = vld [vmem:[#allocation13 + $0x548] ss:$28 sps:$4 sm:$0xff]  }
 0x473   : > { %4343 = vmatpush1.bf16.msra.mxu0 %v6207_v7  ;;  %4386 = vmatpush1.bf16.msra.mxu1 %v6210_v8  ;;  %v6296_v7 = vld [vmem:[#allocation13 + $0x51c] ss:$28 sps:$4 sm:$0xff]  }
 0x474   : > { %4344 = vmatprep.subr.bf16.mxu0 %v6215_v10  ;;  %4387 = vmatprep.subr.bf16.mxu1 %v6218_v12  ;;  %v6291_v8 = vld [vmem:[#allocation13 + $0x198] ss:$28 sps:$4 sm:$0xff]   ;;  %v6299_v12 = vld [vmem:[#allocation13 + $0x164] ss:$28 sps:$4 sm:$0xff]  }
 0x475   : > { %v6294_v10 = vld [vmem:[#allocation13 + $0x518] ss:$28 sps:$4 sm:$0xff]  }
 0x477   : > { %4345 = vmatpush1.bf16.msra.mxu0 %v6213_v13  ;;  %4388 = vmatpush1.bf16.msra.mxu1 %v6216_v14  ;;  %v6302_v13 = vld [vmem:[#allocation13 + $0x4e4] ss:$28 sps:$4 sm:$0xff]  }
 0x478   : > { %4346 = vmatprep.subr.bf16.mxu0 %v6221_v15  ;;  %4389 = vmatprep.subr.bf16.mxu1 %v6224_v16  ;;  %v6297_v14 = vld [vmem:[#allocation13 + $0x160] ss:$28 sps:$4 sm:$0xff]   ;;  %v6305_v16 = vld [vmem:[#allocation13 + $0x12c] ss:$28 sps:$4 sm:$0xff]  }
 0x479   : > { %v6300_v15 = vld [vmem:[#allocation13 + $0x4e0] ss:$28 sps:$4 sm:$0xff]  }
 0x47b   : > { %4347 = vmatpush1.bf16.msra.mxu0 %v6219_v17  ;;  %4390 = vmatpush1.bf16.msra.mxu1 %v6222_v18  ;;  %v6308_v17 = vld [vmem:[#allocation13 + $0x4ac] ss:$28 sps:$4 sm:$0xff]  }
 0x47c   : > { %4348 = vmatprep.subr.bf16.mxu0 %v6227_v19  ;;  %4391 = vmatprep.subr.bf16.mxu1 %v6230_v20  ;;  %v6303_v18 = vld [vmem:[#allocation13 + $0x128] ss:$28 sps:$4 sm:$0xff]   ;;  %v6311_v20 = vld [vmem:[#allocation13 + $0xf4] ss:$28 sps:$4 sm:$0xff]  }
 0x47d   : > { %v6306_v19 = vld [vmem:[#allocation13 + $0x4a8] ss:$28 sps:$4 sm:$0xff]  }
 0x47f   : > { %4349 = vmatpush1.bf16.msra.mxu0 %v6225_v21  ;;  %4392 = vmatpush1.bf16.msra.mxu1 %v6228_v22  ;;  %v6314_v21 = vld [vmem:[#allocation13 + $0x474] ss:$28 sps:$4 sm:$0xff]  }
 0x480   : > { %4350 = vmatprep.subr.bf16.mxu0 %v6233_v23  ;;  %4393 = vmatprep.subr.bf16.mxu1 %v6236_v24  ;;  %v6309_v22 = vld [vmem:[#allocation13 + $0xf0] ss:$28 sps:$4 sm:$0xff]   ;;  %v6317_v24 = vld [vmem:[#allocation13 + $0xbc] ss:$28 sps:$4 sm:$0xff]  }
 0x481   : > { %v6312_v23 = vld [vmem:[#allocation13 + $0x470] ss:$28 sps:$4 sm:$0xff]  }
 0x483   : > { %4351 = vmatpush1.bf16.msra.mxu0 %v6231_v11  ;;  %4394 = vmatpush1.bf16.msra.mxu1 %v6234_v25  ;;  %v6320_v11 = vld [vmem:[#allocation13 + $0x43c] ss:$28 sps:$4 sm:$0xff]  }
 0x484   : > { %4352 = vmatprep.subr.bf16.mxu0 %v6239_v26  ;;  %4395 = vmatprep.subr.bf16.mxu1 %v6242_v27  ;;  %v6315_v25 = vld [vmem:[#allocation13 + $0xb8] ss:$28 sps:$4 sm:$0xff]   ;;  %v6323_v27 = vld [vmem:[#allocation13 + $0x84] ss:$28 sps:$4 sm:$0xff]  }
 0x485   : > { %v6318_v26 = vld [vmem:[#allocation13 + $0x438] ss:$28 sps:$4 sm:$0xff]  }
 0x487   : > { %4353 = vmatpush1.bf16.msra.mxu0 %v6237_v28  ;;  %4396 = vmatpush1.bf16.msra.mxu1 %v6240_v51  ;;  %v6326_v28 = vld [vmem:[#allocation13 + $0x404] ss:$28 sps:$4 sm:$0xff]  }
 0x488   : > { %4354 = vmatprep.subr.bf16.mxu0 %v6245_v29  ;;  %4397 = vmatprep.subr.bf16.mxu1 %v6248_v30  ;;  %v6321_v51 = vld [vmem:[#allocation13 + $0x80] ss:$28 sps:$4 sm:$0xff]   ;;  %v6329_v30 = vld [vmem:[#allocation13 + $0x4c] ss:$28 sps:$4 sm:$0xff]  }
 0x489   : > { %v6324_v29 = vld [vmem:[#allocation13 + $0x400] ss:$28 sps:$4 sm:$0xff]  }
 0x48b   : > { %4355 = vmatpush2.bf16.msra.mxu0 %v6243_v9  ;;  %4398 = vmatpush2.bf16.msra.mxu1 %v6246_v31  ;;  %v6332_v9 = vld [vmem:[#allocation13 + $0x3cc] ss:$28 sps:$4 sm:$0xff]  }
 0x48c   : > { %4356 = vmatprep.subr.bf16.mxu0 %v6251_v32  ;;  %4399 = vmatprep.subr.bf16.mxu1 %v6254_v35  ;;  %v6327_v31 = vld [vmem:[#allocation13 + $0x48] ss:$28 sps:$4 sm:$0xff]   ;;  %v6335_v35 = vld [vmem:[#allocation13 + $0x14] ss:$28 sps:$4 sm:$0xff]  }
 0x48d   : > { %v6330_v32 = vld [vmem:[#allocation13 + $0x3c8] ss:$28 sps:$4 sm:$0xff]  }
 0x48f   : > { %4357 = vmatpush2.bf16.msra.mxu0 %v6249_v36  ;;  %4400 = vmatpush2.bf16.msra.mxu1 %v6252_v37  ;;  %v6338_v36 = vld [vmem:[#allocation13 + $0x394] ss:$28 sps:$4 sm:$0xff]  }
 0x490   : > { %4358 = vmatprep.subr.bf16.mxu0 %v6257_v33  ;;  %4401 = vmatprep.subr.bf16.mxu1 %v6260_v38  ;;  %v6333_v37 = vld [vmem:[#allocation13 + $0x10] ss:$28 sps:$4 sm:$0xff]   ;;  %v6341_v38 = vld [vmem:[#allocation13 + $0x35c] ss:$28 sps:$4 sm:$0xff]  }
 0x491   : > { %v6336_v33 = vld [vmem:[#allocation13 + $0x390] ss:$28 sps:$4 sm:$0xff]  }
 0x493   : > { %4359 = vmatpush2.bf16.msra.mxu0 %v6255_v39  ;;  %4402 = vmatpush2.bf16.msra.mxu1 %v6258_v40  ;;  %v6344_v39 = vld [vmem:[#allocation13 + $0x6dc] ss:$28 sps:$4 sm:$0xff]  }
 0x494   : > { %4360 = vmatprep.subr.bf16.mxu0 %v6263_v41  ;;  %4403 = vmatprep.subr.bf16.mxu1 %v6266_v42  ;;  %v6339_v40 = vld [vmem:[#allocation13 + $0x358] ss:$28 sps:$4 sm:$0xff]   ;;  %v6347_v42 = vld [vmem:[#allocation13 + $0x324] ss:$28 sps:$4 sm:$0xff]  }
 0x495   : > { %v6342_v41 = vld [vmem:[#allocation13 + $0x6d8] ss:$28 sps:$4 sm:$0xff]  }
 0x497   : > { %4361 = vmatpush2.bf16.msra.mxu0 %v6261_v43  ;;  %4404 = vmatpush2.bf16.msra.mxu1 %v6264_v44  ;;  %v6350_v43 = vld [vmem:[#allocation13 + $0x6a4] ss:$28 sps:$4 sm:$0xff]  }
 0x498   : > { %4362 = vmatprep.subr.bf16.mxu0 %v6269_v45  ;;  %4405 = vmatprep.subr.bf16.mxu1 %v6272_v46  ;;  %v6345_v44 = vld [vmem:[#allocation13 + $0x320] ss:$28 sps:$4 sm:$0xff]   ;;  %v6353_v46 = vld [vmem:[#allocation13 + $0x2ec] ss:$28 sps:$4 sm:$0xff]  }
 0x499   : > { %v6348_v45 = vld [vmem:[#allocation13 + $0x6a0] ss:$28 sps:$4 sm:$0xff]  }
 0x49b   : > { %4363 = vmatpush2.bf16.msra.mxu0 %v6267_v47  ;;  %4406 = vmatpush2.bf16.msra.mxu1 %v6270_v48  ;;  %v6356_v47 = vld [vmem:[#allocation13 + $0x66c] ss:$28 sps:$4 sm:$0xff]  }
 0x49c   : > { %4364 = vmatprep.subr.bf16.mxu0 %v6275_v49  ;;  %4407 = vmatprep.subr.bf16.mxu1 %v6278_v50  ;;  %v6351_v48 = vld [vmem:[#allocation13 + $0x2e8] ss:$28 sps:$4 sm:$0xff]   ;;  %v6359_v50 = vld [vmem:[#allocation13 + $0x2b4] ss:$28 sps:$4 sm:$0xff]  }
 0x49d   : > { %v6354_v49 = vld [vmem:[#allocation13 + $0x668] ss:$28 sps:$4 sm:$0xff]  }
 0x49f   : > { %4365 = vmatpush2.bf16.msra.mxu0 %v6273_v53  ;;  %4408 = vmatpush2.bf16.msra.mxu1 %v6276_v54  ;;  %v6362_v53 = vld [vmem:[#allocation13 + $0x634] ss:$28 sps:$4 sm:$0xff]  }
 0x4a0   : > { %4366 = vmatprep.subr.bf16.mxu0 %v6281_v57  ;;  %4409 = vmatprep.subr.bf16.mxu1 %v6284_v61  ;;  %v6357_v54 = vld [vmem:[#allocation13 + $0x2b0] ss:$28 sps:$4 sm:$0xff]   ;;  %v6365_v61 = vld [vmem:[#allocation13 + $0x27c] ss:$28 sps:$4 sm:$0xff]  }
 0x4a1   : > { %v6360_v57 = vld [vmem:[#allocation13 + $0x630] ss:$28 sps:$4 sm:$0xff]  }
 0x4a3   : > { %4367 = vmatpush2.bf16.msra.mxu0 %v6279_v62  ;;  %4410 = vmatpush2.bf16.msra.mxu1 %v6282_v0  ;;  %v6368_v62 = vld [vmem:[#allocation13 + $0x5fc] ss:$28 sps:$4 sm:$0xff]  }
 0x4a4   : > { %4368 = vmatprep.subr.bf16.mxu0 %v6287_v1  ;;  %4411 = vmatprep.subr.bf16.mxu1 %v6290_v2  ;;  %v6363_v0 = vld [vmem:[#allocation13 + $0x278] ss:$28 sps:$4 sm:$0xff]   ;;  %v6371_v2 = vld [vmem:[#allocation13 + $0x244] ss:$28 sps:$4 sm:$0xff]  }
 0x4a5   : > { %v6366_v1 = vld [vmem:[#allocation13 + $0x5f8] ss:$28 sps:$4 sm:$0xff]  }
 0x4a7   : > { %4369 = vmatpush2.bf16.msra.mxu0 %v6285_v3  ;;  %4412 = vmatpush2.bf16.msra.mxu1 %v6288_v5  ;;  %v6374_v3 = vld [vmem:[#allocation13 + $0x5c4] ss:$28 sps:$4 sm:$0xff]  }
 0x4a8   : > { %4424 = vmatprep.subr.bf16.mxu0 %v6293_v6  ;;  %4467 = vmatprep.subr.bf16.mxu1 %v6296_v7  ;;  %v6369_v5 = vld [vmem:[#allocation13 + $0x240] ss:$28 sps:$4 sm:$0xff]   ;;  %v6377_v7 = vld [vmem:[#allocation13 + $0x20c] ss:$28 sps:$4 sm:$0xff]  }
 0x4a9   : > { %v6372_v6 = vld [vmem:[#allocation13 + $0x5c0] ss:$28 sps:$4 sm:$0xff]  }
 0x4aa   : > { %4371 = vmatmul.mubr.bf16.vlgmr.msra.gmra.mxu0 %v7186_v58  ;;  %4414 = vmatmul.mubr.bf16.vlgmr.msra.gmra.mxu1 %v7188_v63 }
 0x4ab   : > { %4425 = vmatpush1.bf16.msra.mxu0 %v6291_v8  ;;  %4456 = vmatprep.mubr.bf16.mxu0 %v7182_v59  ;;  %v6380_v8 = vld [vmem:[#allocation13 + $0x58c] ss:$28 sps:$4 sm:$0xff]  }
 0x4ac   : > { %4468 = vmatpush1.bf16.msra.mxu1 %v6294_v10  ;;  %4499 = vmatprep.mubr.bf16.mxu1 %v7184_v60  ;;  %v6375_v10 = vld [vmem:[#allocation13 + $0x208] ss:$28 sps:$4 sm:$0xff]  }
 0x4ad   : > { %4426 = vmatprep.subr.bf16.mxu0 %v6299_v12  ;;  %4469 = vmatprep.subr.bf16.mxu1 %v6302_v13  ;;  %v6378_v12 = vld [vmem:[#allocation13 + $0x588] ss:$28 sps:$4 sm:$0xff]   ;;  %v6383_v13 = vld [vmem:[#allocation13 + $0x1d4] ss:$28 sps:$4 sm:$0xff]  }
 0x4af   : > { %4427 = vmatpush1.bf16.msra.mxu0 %v6297_v14  ;;  %v6386_v14 = vld [vmem:[#allocation13 + $0x554] ss:$28 sps:$4 sm:$0xff]  }
 0x4b0   : > { %4470 = vmatpush1.bf16.msra.mxu1 %v6300_v15  ;;  %4428 = vmatprep.subr.bf16.mxu0 %v6305_v16  ;;  %v6381_v15 = vld [vmem:[#allocation13 + $0x1d0] ss:$28 sps:$4 sm:$0xff]  }
 0x4b1   : > { %4471 = vmatprep.subr.bf16.mxu1 %v6308_v17  ;;  %v6384_v16 = vld [vmem:[#allocation13 + $0x550] ss:$28 sps:$4 sm:$0xff]   ;;  %v6387_v17 = vld [vmem:[#allocation13 + $0x360] ss:$28 sps:$4 sm:$0xff]  }
 0x4b3   : > { %4429 = vmatpush1.bf16.msra.mxu0 %v6303_v18  ;;  %v6388_v18 = vld [vmem:[#allocation13 + $0x6e0] ss:$28 sps:$4 sm:$0xff]  }
 0x4b4   : > { %4472 = vmatpush1.bf16.msra.mxu1 %v6306_v19  ;;  %4430 = vmatprep.subr.bf16.mxu0 %v6311_v20  ;;  %v6389_v19 = vld [vmem:[#allocation13 + $0x1a0] ss:$28 sps:$4 sm:$0xff]  }
 0x4b5   : > { %4473 = vmatprep.subr.bf16.mxu1 %v6314_v21  ;;  %v6390_v20 = vld [vmem:[#allocation13 + $0x520] ss:$28 sps:$4 sm:$0xff]   ;;  %v6391_v21 = vld [vmem:[#allocation13 + $0x328] ss:$28 sps:$4 sm:$0xff]  }
 0x4b7   : > { %4431 = vmatpush1.bf16.msra.mxu0 %v6309_v22  ;;  %v6392_v22 = vld [vmem:[#allocation13 + $0x6a8] ss:$28 sps:$4 sm:$0xff]  }
 0x4b8   : > { %4474 = vmatpush1.bf16.msra.mxu1 %v6312_v23  ;;  %4432 = vmatprep.subr.bf16.mxu0 %v6317_v24  ;;  %v6393_v23 = vld [vmem:[#allocation13 + $0x168] ss:$28 sps:$4 sm:$0xff]  }
 0x4b9   : > { %4475 = vmatprep.subr.bf16.mxu1 %v6320_v11  ;;  %v6394_v24 = vld [vmem:[#allocation13 + $0x4e8] ss:$28 sps:$4 sm:$0xff]   ;;  %v6395_v11 = vld [vmem:[#allocation13 + $0x2f0] ss:$28 sps:$4 sm:$0xff]  }
 0x4bb   : > { %4433 = vmatpush1.bf16.msra.mxu0 %v6315_v25  ;;  %v6396_v25 = vld [vmem:[#allocation13 + $0x670] ss:$28 sps:$4 sm:$0xff]  }
 0x4bc   : > { %4476 = vmatpush1.bf16.msra.mxu1 %v6318_v26  ;;  %4434 = vmatprep.subr.bf16.mxu0 %v6323_v27  ;;  %v6397_v26 = vld [vmem:[#allocation13 + $0x130] ss:$28 sps:$4 sm:$0xff]  }
 0x4bd   : > { %4477 = vmatprep.subr.bf16.mxu1 %v6326_v28  ;;  %v6398_v27 = vld [vmem:[#allocation13 + $0x4b0] ss:$28 sps:$4 sm:$0xff]   ;;  %v6399_v28 = vld [vmem:[#allocation13 + $0x2b8] ss:$28 sps:$4 sm:$0xff]  }
 0x4bf   : > { %4435 = vmatpush1.bf16.msra.mxu0 %v6321_v51  ;;  %v6400_v51 = vld [vmem:[#allocation13 + $0x638] ss:$28 sps:$4 sm:$0xff]  }
 0x4c0   : > { %4478 = vmatpush1.bf16.msra.mxu1 %v6324_v29  ;;  %4436 = vmatprep.subr.bf16.mxu0 %v6329_v30  ;;  %v6401_v29 = vld [vmem:[#allocation13 + $0xf8] ss:$28 sps:$4 sm:$0xff]   ;;  %v6403_v30 = vld [vmem:[#allocation13 + $0x280] ss:$28 sps:$4 sm:$0xff]  }
 0x4c1   : > { %4479 = vmatprep.subr.bf16.mxu1 %v6332_v9  ;;  %v6404_v9 = vld [vmem:[#allocation13 + $0x600] ss:$28 sps:$4 sm:$0xff]  }
 0x4c3   : > { %4437 = vmatpush1.bf16.msra.mxu0 %v6327_v31  ;;  %v6406_v31 = vld [vmem:[#allocation13 + $0x440] ss:$28 sps:$4 sm:$0xff]  }
 0x4c4   : > { %4480 = vmatpush1.bf16.msra.mxu1 %v6330_v32  ;;  %4438 = vmatprep.subr.bf16.mxu0 %v6335_v35  ;;  %v6407_v32 = vld [vmem:[#allocation13 + $0x248] ss:$28 sps:$4 sm:$0xff]  }
 0x4c5   : > { %4481 = vmatprep.subr.bf16.mxu1 %v6338_v36  ;;  %v6408_v35 = vld [vmem:[#allocation13 + $0x5c8] ss:$28 sps:$4 sm:$0xff]  }
 0x4c6   : > { %v6409_v36 = vld [vmem:[#allocation13 + $0x88] ss:$28 sps:$4 sm:$0xff]  }
 0x4c7   : > { %4439 = vmatpush1.bf16.msra.mxu0 %v6333_v37  ;;  %v6410_v37 = vld [vmem:[#allocation13 + $0x408] ss:$28 sps:$4 sm:$0xff]  }
 0x4c8   : > { %4482 = vmatpush1.bf16.msra.mxu1 %v6336_v33  ;;  %4440 = vmatprep.subr.bf16.mxu0 %v6341_v38  ;;  %v6411_v33 = vld [vmem:[#allocation13 + $0x210] ss:$28 sps:$4 sm:$0xff]  }
 0x4c9   : > { %4483 = vmatprep.subr.bf16.mxu1 %v6344_v39  ;;  %v6412_v38 = vld [vmem:[#allocation13 + $0x590] ss:$28 sps:$4 sm:$0xff]  }
 0x4ca   : > { %v6413_v39 = vld [vmem:[#allocation13 + $0x50] ss:$28 sps:$4 sm:$0xff]  }
 0x4cb   : > { %4441 = vmatpush2.bf16.msra.mxu0 %v6339_v40  ;;  %v6414_v40 = vld [vmem:[#allocation13 + $0x3d0] ss:$28 sps:$4 sm:$0xff]  }
 0x4cc   : > { %4484 = vmatpush2.bf16.msra.mxu1 %v6342_v41  ;;  %4442 = vmatprep.subr.bf16.mxu0 %v6347_v42  ;;  %v6415_v41 = vld [vmem:[#allocation13 + $0x1d8] ss:$28 sps:$4 sm:$0xff]  }
 0x4cd   : > { %4485 = vmatprep.subr.bf16.mxu1 %v6350_v43  ;;  %v6416_v42 = vld [vmem:[#allocation13 + $0x558] ss:$28 sps:$4 sm:$0xff]  }
 0x4ce   : > { %v6417_v43 = vld [vmem:[#allocation13 + $0x18] ss:$28 sps:$4 sm:$0xff]  }
 0x4cf   : > { %4443 = vmatpush2.bf16.msra.mxu0 %v6345_v44  ;;  %v6418_v44 = vld [vmem:[#allocation13 + $0x398] ss:$28 sps:$4 sm:$0xff]  }
 0x4d0   : > { %4486 = vmatpush2.bf16.msra.mxu1 %v6348_v45  ;;  %4444 = vmatprep.subr.bf16.mxu0 %v6353_v46  ;;  %v7209_v45 = vld [vmem:[%s7328_s9] sm:$0xff] }
 0x4d1   : > { %4487 = vmatprep.subr.bf16.mxu1 %v6356_v47  ;;  %v3068_v46 = vrot.slane %v7209_v45, %v7149_v56  ;;  %v3072_v47 = vrot.slane %v7209_v45, %v7146_v55 }
 0x4d3   : > { %4445 = vmatpush2.bf16.msra.mxu0 %v6351_v48 }
 0x4d4   : > { %4488 = vmatpush2.bf16.msra.mxu1 %v6354_v49  ;;  %4446 = vmatprep.subr.bf16.mxu0 %v6359_v50 }
 0x4d5   : > { %4489 = vmatprep.subr.bf16.mxu1 %v6362_v53 }
 0x4d7   : > { %4447 = vmatpush2.bf16.msra.mxu0 %v6357_v54 }
 0x4d8   : > { %4490 = vmatpush2.bf16.msra.mxu1 %v6360_v57  ;;  %4448 = vmatprep.subr.bf16.mxu0 %v6365_v61 }
 0x4d9   : > { %4491 = vmatprep.subr.bf16.mxu1 %v6368_v62 }
 0x4db   : > { %4449 = vmatpush2.bf16.msra.mxu0 %v6363_v0 }
 0x4dc   : > { %4492 = vmatpush2.bf16.msra.mxu1 %v6366_v1  ;;  %4450 = vmatprep.subr.bf16.mxu0 %v6371_v2 }
 0x4dd   : > { %4493 = vmatprep.subr.bf16.mxu1 %v6374_v3 }
 0x4df   : > { %4451 = vmatpush2.bf16.msra.mxu0 %v6369_v5 }
 0x4e0   : > { %4494 = vmatpush2.bf16.msra.mxu1 %v6372_v6  ;;  %4452 = vmatprep.subr.bf16.mxu0 %v6377_v7 }
 0x4e1   : > { %4495 = vmatprep.subr.bf16.mxu1 %v6380_v8 }
 0x4e3   : > { %4453 = vmatpush2.bf16.msra.mxu0 %v6375_v10 }
 0x4e4   : > { %4496 = vmatpush2.bf16.msra.mxu1 %v6378_v12  ;;  %4454 = vmatprep.subr.bf16.mxu0 %v6383_v13 }
 0x4e5   : > { %4497 = vmatprep.subr.bf16.mxu1 %v6386_v14 }
 0x4e7   : > { %4455 = vmatpush2.bf16.msra.mxu0 %v6381_v15 }
 0x4e8   : > { %4498 = vmatpush2.bf16.msra.mxu1 %v6384_v16  ;;  %5546 = vmatprep.subr.bf16.mxu0 %v6387_v17 }
 0x4e9   : > { %5568 = vmatprep.subr.bf16.mxu1 %v6388_v18 }
 0x4ea   : > { %4457 = vmatmul.mubr.bf16.vlgmr.msra.gmra.mxu0 %v7186_v58 }
 0x4eb   : > { %4500 = vmatmul.mubr.bf16.vlgmr.msra.gmra.mxu1 %v7188_v63  ;;  %5547 = vmatpush3.bf16.msra.mxu0 %v6389_v19 }
 0x4ec   : > { %4542 = vmatprep.mubr.bf16.mxu0 %v7182_v59  ;;  %5569 = vmatpush3.bf16.msra.mxu1 %v6390_v20  ;;  %v6402_v59 = vld [vmem:[#allocation13 + $0x478] ss:$28 sps:$4 sm:$0xff]  }
 0x4ed   : > { %4583 = vmatprep.mubr.bf16.mxu1 %v7184_v60  ;;  %5548 = vmatprep.subr.bf16.mxu0 %v6391_v21  ;;  %v6405_v60 = vld [vmem:[#allocation13 + $0xc0] ss:$28 sps:$4 sm:$0xff]  }
 0x4ee   : > { %5570 = vmatprep.subr.bf16.mxu1 %v6392_v22 }
 0x4ef   : > { %5549 = vmatpush3.bf16.msra.mxu0 %v6393_v23 }
 0x4f0   : > { %5571 = vmatpush3.bf16.msra.mxu1 %v6394_v24  ;;  %5550 = vmatprep.subr.bf16.mxu0 %v6395_v11  ;;  %v3076_v11 = vrot.slane %v7209_v45, %v7161_v34 }
 0x4f1   : > { %5572 = vmatprep.subr.bf16.mxu1 %v6396_v25  ;;  %v3080_v25 = vrot.slane %v7209_v45, %v7158_v4 }
 0x4f3   : > { %5551 = vmatpush3.bf16.msra.mxu0 %v6397_v26 }
 0x4f4   : > { %5573 = vmatpush3.bf16.msra.mxu1 %v6398_v27  ;;  %5552 = vmatprep.subr.bf16.mxu0 %v6399_v28 }
 0x4f5   : > { %5574 = vmatprep.subr.bf16.mxu1 %v6400_v51 }
 0x4f7   : > { %5553 = vmatpush3.bf16.msra.mxu0 %v6401_v29 }
 0x4f8   : > { %5575 = vmatpush3.bf16.msra.mxu1 %v6402_v59  ;;  %5554 = vmatprep.subr.bf16.mxu0 %v6403_v30 }
 0x4f9   : > { %5576 = vmatprep.subr.bf16.mxu1 %v6404_v9 }
 0x4fb   : > { %5555 = vmatpush3.bf16.msra.mxu0 %v6405_v60 }
 0x4fc   : > { %5577 = vmatpush3.bf16.msra.mxu1 %v6406_v31  ;;  %5556 = vmatprep.subr.bf16.mxu0 %v6407_v32 }
 0x4fd   : > { %5578 = vmatprep.subr.bf16.mxu1 %v6408_v35 }
 0x4ff   : > { %5557 = vmatpush3.bf16.msra.mxu0 %v6409_v36 }
 0x500   : > { %5579 = vmatpush3.bf16.msra.mxu1 %v6410_v37  ;;  %5558 = vmatprep.subr.bf16.mxu0 %v6411_v33 }
 0x501   : > { %5580 = vmatprep.subr.bf16.mxu1 %v6412_v38 }
 0x503   : > { %5559 = vmatpush3.bf16.msra.mxu0 %v6413_v39 }
 0x504   : > { %5581 = vmatpush3.bf16.msra.mxu1 %v6414_v40  ;;  %5560 = vmatprep.subr.bf16.mxu0 %v6415_v41 }
 0x505   : > { %5582 = vmatprep.subr.bf16.mxu1 %v6416_v42 }
 0x507   : > { %5561 = vmatpush3.bf16.msra.mxu0 %v6417_v43 }
 0x508   : > { %5583 = vmatpush3.bf16.msra.mxu1 %v6418_v44 }
 0x50a   : > { %4543 = vmatmul.mubr.bf16.vlgmr.msra.gmra.mxu0 %v7186_v58 }
 0x50b   : > { %4584 = vmatmul.mubr.bf16.vlgmr.msra.gmra.mxu1 %v7188_v63 }
 0x52a   : > { %v4286_v48 = vpop.f32.mrf.mxu0  ;;  %v4329_v49 = vpop.f32.mrf.mxu1 }
 0x52b   : > { %v4287_v50 = vadd.f32 %v4286_v48, %v3068_v46 }
 0x52c   : > { %v4288_v53 = vpop.f32.mrf.mxu0  ;;  %v4331_v54 = vpop.f32.mrf.mxu1 }
 0x52d   : > { %v4330_v57 = vadd.f32 %v4329_v49, %v4287_v50  ;;  %v4289_v58 = vadd.f32 %v4288_v53, %v3072_v47 }
 0x52e   : > { %v4290_v61 = vpop.f32.mrf.mxu0  ;;  %v4333_v63 = vpop.f32.mrf.mxu1 }
 0x52f   : > { %v5460_v62 = vmul.f32 -1.442695, %v4330_v57  ;;  %v4332_v0 = vadd.f32 %v4331_v54, %v4289_v58  ;;  %v4291_v1 = vadd.f32 %v4290_v61, %v3068_v46 }
 0x530   : > { %v4292_v2 = vpop.f32.mrf.mxu0  ;;  %v4335_v6 = vpop.f32.mrf.mxu1 }
 0x531   : > { %6423 = vpow2.f32 %v5460_v62  ;;  %v5461_v3 = vmul.f32 -1.442695, %v4332_v0  ;;  %v4334_v5 = vadd.f32 %v4333_v63, %v4291_v1  ;;  %v4293_v56 = vadd.f32 %v4292_v2, %v3072_v47 }
 0x533   : > { %6425 = vpow2.f32 %v5461_v3  ;;  %v5467_v55 = vmul.f32 -1.442695, %v4334_v5  ;;  %v4336_v7 = vadd.f32 %v4335_v6, %v4293_v56 }
 0x535   : > { %6427 = vpow2.f32 %v5467_v55  ;;  %v5468_v8 = vmul.f32 -1.442695, %v4336_v7 }
 0x537   : > { %6429 = vpow2.f32 %v5468_v8 }
 0x53e   : > { %v6424_v10 = vpop.eup %6423 }
 0x53f   : > { %v4634_v12 = vadd.f32 1.0, %v6424_v10 }
 0x540   : > { %v6426_v13 = vpop.eup %6425 }
 0x541   : > { %v4635_v14 = vadd.f32 1.0, %v6426_v13  ;;  %6431 = vrcp.f32 %v4634_v12 }
 0x542   : > { %v6428_v15 = vpop.eup %6427 }
 0x543   : > { %6433 = vrcp.f32 %v4635_v14  ;;  %v4641_v16 = vadd.f32 1.0, %v6428_v15 }
 0x544   : > { %v6430_v17 = vpop.eup %6429 }
 0x545   : > { %v4642_v18 = vadd.f32 1.0, %v6430_v17  ;;  %6435 = vrcp.f32 %v4641_v16 }
 0x547   : > { %6437 = vrcp.f32 %v4642_v18 }
 0x54e   : > { %v6432_v19 = vpop.eup %6431 }
 0x550   : > { %v6434_v20 = vpop.eup %6433 }
 0x551   : > { %v5492_v21 = vpack.c.bf16 %v6434_v20, %v6432_v19 }
 0x552   : > { %v6436_v22 = vpop.eup %6435 }
 0x553   : > { %4720 = vst [vmem:[%s7217_s26] sm:$0xff] %v5492_v21 }
 0x554   : > { %v6438_v23 = vpop.eup %6437 }
 0x555   : > { %v5496_v24 = vpack.c.bf16 %v6438_v23, %v6436_v22 }
 0x557   : > { %4724 = vst [vmem:[%s7217_s26 + $0x1c] sm:$0xff] %v5496_v24 }
 0x56a   : > { %v4372_v26 = vpop.f32.mrf.mxu0  ;;  %v4415_v27 = vpop.f32.mrf.mxu1 }
 0x56b   : > { %v4373_v28 = vadd.f32 %v4372_v26, %v3076_v11 }
 0x56c   : > { %v4374_v51 = vpop.f32.mrf.mxu0  ;;  %v4417_v29 = vpop.f32.mrf.mxu1 }
 0x56d   : > { %v4416_v59 = vadd.f32 %v4415_v27, %v4373_v28  ;;  %v4375_v30 = vadd.f32 %v4374_v51, %v3080_v25 }
 0x56e   : > { %v4376_v9 = vpop.f32.mrf.mxu0  ;;  %v4419_v60 = vpop.f32.mrf.mxu1 }
 0x56f   : > { %v5462_v31 = vmul.f32 -1.442695, %v4416_v59  ;;  %v4418_v32 = vadd.f32 %v4417_v29, %v4375_v30  ;;  %v4377_v35 = vadd.f32 %v4376_v9, %v3076_v11 }
 0x570   : > { %v4378_v36 = vpop.f32.mrf.mxu0  ;;  %v4421_v33 = vpop.f32.mrf.mxu1 }
 0x571   : > { %6439 = vpow2.f32 %v5462_v31  ;;  %v5463_v34 = vmul.f32 -1.442695, %v4418_v32  ;;  %v4420_v37 = vadd.f32 %v4419_v60, %v4377_v35  ;;  %v4379_v4 = vadd.f32 %v4378_v36, %v3080_v25 }
 0x573   : > { %6441 = vpow2.f32 %v5463_v34  ;;  %v5469_v38 = vmul.f32 -1.442695, %v4420_v37  ;;  %v4422_v39 = vadd.f32 %v4421_v33, %v4379_v4 }
 0x575   : > { %6443 = vpow2.f32 %v5469_v38  ;;  %v5470_v40 = vmul.f32 -1.442695, %v4422_v39 }
 0x577   : > { %6445 = vpow2.f32 %v5470_v40 }
 0x57e   : > { %v6440_v41 = vpop.eup %6439 }
 0x57f   : > { %v4636_v42 = vadd.f32 1.0, %v6440_v41 }
 0x580   : > { %6680 = shalt.err (!%p6677_p8)
}
 0x581   : > { %s6681_s30 = scalar_lea.hbm %s7232_s0, 512  ;;  %s6685_s27 = scalar_lea.hbm %s7330_s11, 1024 }
 0x582   : > { %p6682_p3 = scmp.ne.s32.totalorder %s7232_s0, %s6681_s30  ;;  %p6686_p2 = scmp.lt.s32.totalorder %s7232_s0, %s7330_s11 }
 0x583   : > { %p6687_p10 = scmp.lt.s32.totalorder %s6685_s27, %s6681_s30 }
 0x584   : > { %p6683_p5 = pnand %p6682_p3, %p7371_p7 }
 0x585   : > { %p6688_p0 = por %p6687_p10, %p6686_p2 }
 0x586   : > { %p6684_p12 = pneg %p6683_p5 }
 0x588   : > { %p6689_p13 = pnand %p6688_p0, %p6684_p12 }
 0x58a   : > { %6692 = shalt.err (!%p6689_p13)
}
 0x58b   : > { %s6797_s12 = smov 256   ;;  %s6798_s21 = smov 16   ;;  %v6442_v43 = vpop.eup %6441  ;;  %6447 = vrcp.f32 %v4636_v42  ;;  %v3083_v63 = vsub.s32 4, %v7143_v52  ;;  %v3087_v62 = vsub.s32 5, %v7143_v52  ;;  %v3091_v29 = vsub.s32 6, %v7143_v52 }
 0x58c   : > { %5619 = dma.vmem_to_hbm [thread:$0]  (%p7371_p7), %s7226_s2, 512, %s7232_s0, %s4738_s19, %s6797_s12, %s6797_s12, %s6798_s21   ;;  %v4637_v44 = vadd.f32 1.0, %v6442_v43  ;;  %v6444_v46 = vpop.eup %6443 }
 0x58d   : > { %v4643_v47 = vadd.f32 1.0, %v6444_v46  ;;  %v6446_v48 = vpop.eup %6445  ;;  %v3084_v0 = vrot.slane %v7209_v45, %v3083_v63  ;;  %v3088_v1 = vrot.slane %v7209_v45, %v3087_v62  ;;  %v3092_v9 = vrot.slane %v7209_v45, %v3091_v29  ;;  %s5593_s2 = smul.u32 896, %s6883_s23  ;;  %s4752_s4 = sshll.u32 %s7217_s26, 4  ;;  %s7275_s4 = int_to_ptr.vmem [resolvable:$true] %s4752_s4 }
 0x58e   : > { %6449 = vrcp.f32 %v4637_v44  ;;  %v4644_v49 = vadd.f32 1.0, %v6446_v48  ;;  %s4733_s24 = scalar_lea.sflag [#allocation4], %s7078_s13  ;;  %s6693_s14 = scalar_lea.vmem %s7275_s4, 896 }
 0x58f   : > { %6451 = vrcp.f32 %v4643_v47  ;;  %s7273_s19 = scalar_lea.hbm %s7329_s10, %s5593_s2  ;;  %p6694_p9 = scmp.ne.s32.totalorder %s7275_s4, %s6693_s14 }
 0x590   : > { %6453 = vrcp.f32 %v4644_v49  ;;  %s6799_s23 = smov [#allocation14]  }
 0x591   : > { %p6695_p11 = pnand %p6694_p9, %p7371_p7  ;;  %s6697_s28 = sshll.u32 %s6799_s23, 4  ;;  %s6698_s28 = int_to_ptr.vmem [resolvable:$false] %s6697_s28 }
 0x592   : > { %s6699_s22 = scalar_lea.vmem %s6698_s28, 1792  ;;  %p6700_p4 = scmp.lt.s32.totalorder %s7275_s4, %s6698_s28 }
 0x593   : > { %p6696_p1 = pneg %p6695_p11  ;;  %p6701_p6 = scmp.lt.s32.totalorder %s6699_s22, %s6693_s14 }
 0x595   : > { %p6702_p8 = por %p6701_p6, %p6700_p4 }
 0x597   : > { %p6703_p3 = pnand %p6702_p8, %p6696_p1 }
 0x598   : > { %v6448_v50 = vpop.eup %6447 }
 0x59b   : > { %v6450_v53 = vpop.eup %6449 }
 0x59c   : > { %v5493_v54 = vpack.c.bf16 %v6450_v53, %v6448_v50  ;;  %v6452_v57 = vpop.eup %6451 }
 0x59d   : > { %v6454_v58 = vpop.eup %6453 }
 0x59e   : > { %4721 = vst [vmem:[%s7217_s26 + $0x8] sm:$0xff] %v5493_v54  ;;  %v5497_v61 = vpack.c.bf16 %v6454_v58, %v6452_v57 }
 0x5a0   : > { %4725 = vst [vmem:[%s7217_s26 + $0x24] sm:$0xff] %v5497_v61 }
 0x5aa   : > { %v4458_v2 = vpop.f32.mrf.mxu0 }
 0x5ab   : > { %v4459_v3 = vadd.f32 %v4458_v2, %v3084_v0  ;;  %v4501_v5 = vpop.f32.mrf.mxu1 }
 0x5ac   : > { %v4460_v56 = vpop.f32.mrf.mxu0 }
 0x5ad   : > { %v4502_v6 = vadd.f32 %v4501_v5, %v4459_v3  ;;  %v4461_v55 = vadd.f32 %v4460_v56, %v3088_v1  ;;  %v4503_v7 = vpop.f32.mrf.mxu1 }
 0x5ae   : > { %v4462_v8 = vpop.f32.mrf.mxu0 }
 0x5af   : > { %v5464_v10 = vmul.f32 -1.442695, %v4502_v6  ;;  %v4504_v12 = vadd.f32 %v4503_v7, %v4461_v55  ;;  %v4463_v13 = vadd.f32 %v4462_v8, %v3084_v0  ;;  %v4505_v14 = vpop.f32.mrf.mxu1 }
 0x5b0   : > { %v4464_v15 = vpop.f32.mrf.mxu0 }
 0x5b1   : > { %6455 = vpow2.f32 %v5464_v10  ;;  %v5465_v16 = vmul.f32 -1.442695, %v4504_v12  ;;  %v4506_v17 = vadd.f32 %v4505_v14, %v4463_v13  ;;  %v4465_v18 = vadd.f32 %v4464_v15, %v3088_v1  ;;  %v4507_v19 = vpop.f32.mrf.mxu1 }
 0x5b3   : > { %6457 = vpow2.f32 %v5465_v16  ;;  %v5471_v20 = vmul.f32 -1.442695, %v4506_v17  ;;  %v4508_v21 = vadd.f32 %v4507_v19, %v4465_v18 }
 0x5b5   : > { %6459 = vpow2.f32 %v5471_v20  ;;  %v5472_v22 = vmul.f32 -1.442695, %v4508_v21 }
 0x5b7   : > { %6461 = vpow2.f32 %v5472_v22 }
 0x5be   : > { %v6456_v23 = vpop.eup %6455 }
 0x5bf   : > { %v4638_v24 = vadd.f32 1.0, %v6456_v23 }
 0x5c0   : > { %v6458_v11 = vpop.eup %6457 }
 0x5c1   : > { %v4639_v25 = vadd.f32 1.0, %v6458_v11  ;;  %6463 = vrcp.f32 %v4638_v24 }
 0x5c2   : > { %v6460_v26 = vpop.eup %6459 }
 0x5c3   : > { %6465 = vrcp.f32 %v4639_v25  ;;  %v4645_v27 = vadd.f32 1.0, %v6460_v26 }
 0x5c4   : > { %v6462_v28 = vpop.eup %6461 }
 0x5c5   : > { %v4646_v51 = vadd.f32 1.0, %v6462_v28  ;;  %6467 = vrcp.f32 %v4645_v27 }
 0x5c7   : > { %6469 = vrcp.f32 %v4646_v51 }
 0x5ca   : > { %v5562_v59 = vpop.f32.mrf.mxu0 }
 0x5cb   : > { %v5584_v30 = vpop.f32.mrf.mxu1 }
 0x5cc   : > { %v5563_v60 = vpop.f32.mrf.mxu0 }
 0x5cd   : > { %v5564_v31 = vadd.f32 %v5563_v60, %v5562_v59  ;;  %v5585_v32 = vpop.f32.mrf.mxu1 }
 0x5ce   : > { %v5565_v35 = vpop.f32.mrf.mxu0  ;;  %v6464_v36 = vpop.eup %6463  ;;  %v5586_v37 = vadd.f32 %v5585_v32, %v5584_v30 }
 0x5cf   : > { %v4545_v34 = vadd.f32 %v5564_v31, %v3092_v9  ;;  %v5587_v4 = vpop.f32.mrf.mxu1 }
 0x5d0   : > { %v6466_v33 = vpop.eup %6465  ;;  %v5566_v38 = vpop.f32.mrf.mxu0 }
 0x5d1   : > { %v5494_v39 = vpack.c.bf16 %v6466_v33, %v6464_v36  ;;  %v4586_v40 = vadd.f32 %v5586_v37, %v4545_v34  ;;  %v5567_v41 = vadd.f32 %v5566_v38, %v5565_v35  ;;  %v5588_v52 = vpop.f32.mrf.mxu1 }
 0x5d2   : > { %v6468_v42 = vpop.eup %6467  ;;  %v5589_v44 = vadd.f32 %v5588_v52, %v5587_v4 }
 0x5d3   : > { %4722 = vst [vmem:[%s7217_s26 + $0x10] sm:$0xff] %v5494_v39  ;;  %v5466_v43 = vmul.f32 -1.442695, %v4586_v40  ;;  %v4548_v45 = vadd.f32 %v5567_v41, %v3092_v9 }
 0x5d4   : > { %v6470_v46 = vpop.eup %6469 }
 0x5d5   : > { %v5498_v47 = vpack.c.bf16 %v6470_v46, %v6468_v42  ;;  %6471 = vpow2.f32 %v5466_v43  ;;  %v4589_v48 = vadd.f32 %v5589_v44, %v4548_v45 }
 0x5d7   : > { %4726 = vst [vmem:[%s7217_s26 + $0x2c] sm:$0xff] %v5498_v47  ;;  %v5473_v49 = vmul.f32 -1.442695, %v4589_v48 }
 0x5d9   : > { %6473 = vpow2.f32 %v5473_v49 }
 0x5e2   : > { %v6472_v50 = vpop.eup %6471 }
 0x5e3   : > { %v4640_v53 = vadd.f32 1.0, %v6472_v50 }
 0x5e5   : > { %6475 = vrcp.f32 %v4640_v53 }
 0x5e6   : > { %v6474_v54 = vpop.eup %6473 }
 0x5e7   : > { %v4647_v57 = vadd.f32 1.0, %v6474_v54 }
 0x5e9   : > { %6477 = vrcp.f32 %v4647_v57 }
 0x5f2   : > { %v6476_v58 = vpop.eup %6475 }
 0x5f3   : > { %v5495_v61 = vpack.c.bf16 %v6476_v58, %v6476_v58 }
 0x5f5   : > { %4723 = vst [vmem:[%s7217_s26 + $0x18] sm:$0xf] %v5495_v61 }
 0x5f6   : > { %v6478_v63 = vpop.eup %6477 }
 0x5f7   : > { %v5499_v62 = vpack.c.bf16 %v6478_v63, %v6478_v63 }
 0x5f9   : > { %4727 = vst [vmem:[%s7217_s26 + $0x34] sm:$0xf] %v5499_v62 }
 0x5fa   : > { %6706 = shalt.err (!%p6703_p3)
}
 0x5fb   : > { %s6707_s26 = scalar_lea.hbm %s7273_s19, 896  ;;  %s6711_s7 = scalar_lea.hbm %s7329_s10, 1792 }
 0x5fc   : > { %p6708_p5 = scmp.ne.s32.totalorder %s7273_s19, %s6707_s26  ;;  %p6712_p10 = scmp.lt.s32.totalorder %s7273_s19, %s7329_s10 }
 0x5fd   : > { %p6713_p0 = scmp.lt.s32.totalorder %s6711_s7, %s6707_s26 }
 0x5fe   : > { %p6709_p12 = pnand %p6708_p5, %p7371_p7 }
 0x5ff   : > { %p6714_p13 = por %p6713_p0, %p6712_p10 }
 0x600   : > { %p6710_p2 = pneg %p6709_p12 }
 0x602   : > { %p6715_p9 = pnand %p6714_p13, %p6710_p2 }
 0x604   : > { %6718 = shalt.err (!%p6715_p9)
}
 0x605   : > { %s6800_s25 = smov 448   ;;  %s6801_s12 = smov 28  }
 0x606   : > { %5618 = dma.vmem_to_hbm [thread:$0]  (%p7371_p7), %s7275_s4, 896, %s7273_s19, %s4733_s24, %s6800_s25, %s6800_s25, %s6801_s12  }
 0x607 PF: > { %s4784_s21 = sand.u32 1, %s6765_s17   ;;  %p7372_p11 = scmp.ne.s32.totalorder %s7358_s16, 0 }
 0x608   : > { %p7373_p1 = scmp.ge.s32.totalorder %s6777_s20, 2  ;;  %s4785_s2 = scalar_lea.sflag [#allocation4], %s4784_s21 }
 0x60a   : > { %p5646_p4 = pnand %p7373_p1, %p7372_p11 }
 0x60c   : > { %p5647_p6 = pneg %p5646_p4 }
 0x60e   : > { %6756 = dma.done.wait (%p5647_p6), %s4785_s2, 896  }
 0x60f   : > { %6758 = vsyncadd (%p5647_p6), %s4785_s2, 4294966400  ;;  %s4794_s6 = scalar_lea.sflag [#allocation16], %s4784_s21 }
 0x610   : > { %6760 = dma.done.wait (%p5647_p6), %s4794_s6, 512  }
 0x611   : > { %6762 = vsyncadd (%p5647_p6), %s4794_s6, 4294966784  ;;  %s7374_s20 = sld [smem:[#allocation25_spill]]  ;;  %s7377_s17 = smov %s6769_s18 }
 0x612   : > { %s7375_s29 = sld [smem:[#allocation24_spill]] }
 0x613   : > { %s7376_s19 = sld [smem:[#allocation26_spill]] }
 0x617   : > { %p33_p7 = scmp.ge.s32.totalorder %s7374_s20, 4  }
 0x618   : > { %s7378_s18 = smov %s7375_s29 }
 0x619   :  { %35 = sbr.rel (!%p33_p7) target bundleno = 18 (0x12), region = 155 }
 0x61e   :  { %4799 = vsyncpa [#allocation3], 1 }
 0x61f   :  { %4801 = vsyncpa [#allocation3 + $0x1], 1 }
 0x620   :  { %4802 = vsyncpa [#allocation6], 1 }
 0x621   :  { %4804 = vsyncpa [#allocation6 + $0x1], 1 }
 0x622   :  { %4805 = vsyncpa [#allocation9], 1 }
 0x623   :  { %4806 = vsyncpa [#allocation12], 1 }
 0x624   :  { %4807 = vsyncpa [#allocation4], 1 }
 0x625   :  { %4809 = vsyncpa [#allocation4 + $0x1], 1 }
 0x626   :  { %4810 = vsyncpa [#allocation16], 1 }
 0x627   :  { %4812 = vsyncpa [#allocation16 + $0x1], 1 }

</bundles_post_ra>
